<compile_context>
chip_gen: v6e
topology: v6e:2x2x1
jax: 0.10.0
libtpu: 0.0.40
codegen_flags: <defaults>
</compile_context>

<pallas_src>
import jax
import jax.numpy as jnp
from jax.experimental import pallas as pl
from jax.experimental.pallas import tpu as pltpu


# ----------------------------------------------------------------------------
# helpers
# ----------------------------------------------------------------------------
def _round_up(x, m):
    return ((x + m - 1) // m) * m


_VMEM_SPEC = pl.BlockSpec(memory_space=pltpu.MemorySpace.VMEM)


# ----------------------------------------------------------------------------
# Encoder kernel (synthetic stand-in for the injected encoder module)
# ----------------------------------------------------------------------------
def _encoder_kernel(emb_x_ref, emb_c_ref, pmr_emb_ref, pmr_sc_ref, mask_x_ref,
                    w_x_ref, b_x_ref, w_c_ref, b_c_ref, w_p_ref, b_p_ref,
                    x_sen_ref, sen_hid_ref, sen_c_ref, x_con_ref, pmr_mat_ref):
    # sentence projection (bf16 MXU inputs, f32 accumulate)
    x_sen = jnp.tanh(
        jnp.einsum('ble,eh->blh', emb_x_ref[...], w_x_ref[...],
                   preferred_element_type=jnp.float32) + b_x_ref[...])
    x_sen_ref[...] = x_sen.astype(x_sen_ref.dtype)

    # length-aware masked mean pooling -> initial decoder hidden / cell state
    mask = mask_x_ref[...]                                    # (B, Lx) f32
    denom = jnp.maximum(jnp.sum(mask, axis=1, keepdims=True), 1.0)
    pooled = jnp.sum(x_sen * mask[:, :, None], axis=1) / denom
    sen_hid_ref[...] = jnp.tanh(pooled)
    sen_c_ref[...] = pooled

    # context projection
    x_con = jnp.tanh(
        jnp.einsum('ble,eh->blh', emb_c_ref[...], w_c_ref[...],
                   preferred_element_type=jnp.float32) + b_c_ref[...])
    x_con_ref[...] = x_con.astype(x_con_ref.dtype)

    # p / m / r projections stacked into ONE einsum (B, 3P, E) -> (B, 3P, H2)
    pmr = jnp.tanh(
        jnp.einsum('bpe,eh->bph', pmr_emb_ref[...], w_p_ref[...],
                   preferred_element_type=jnp.float32) + b_p_ref[...])
    pmr = pmr * pmr_sc_ref[...][:, :, None]                   # score-weighted
    pmr_mat_ref[...] = pmr.astype(pmr_mat_ref.dtype)


def run_encoder(params, emb_x, emb_c, pmr_emb, pmr_score, mask_x):
    B, Lx, _ = emb_x.shape
    Lc = emb_c.shape[1]
    P3 = pmr_emb.shape[1]
    H2 = params['w_enc_x'].shape[1]
    out_shape = (
        jax.ShapeDtypeStruct((B, Lx, H2), jnp.bfloat16),   # x_sen
        jax.ShapeDtypeStruct((B, H2), jnp.float32),        # sen_hid
        jax.ShapeDtypeStruct((B, H2), jnp.float32),        # sen_c
        jax.ShapeDtypeStruct((B, Lc, H2), jnp.bfloat16),   # x_con
        jax.ShapeDtypeStruct((B, P3, H2), jnp.bfloat16),   # stacked p/m/r matrix
    )
    return pl.pallas_call(
        _encoder_kernel,
        out_shape=out_shape,
        in_specs=[_VMEM_SPEC] * 11,
        out_specs=tuple([_VMEM_SPEC] * 5),
    )(emb_x, emb_c, pmr_emb, pmr_score, mask_x,
      params['w_enc_x'], params['b_enc_x'],
      params['w_enc_c'], params['b_enc_c'],
      params['w_pmr'], params['b_pmr'])


# ----------------------------------------------------------------------------
# Fused decoder: all T steps in one pallas_call (grid=(T,))
# ----------------------------------------------------------------------------
def _make_decoder_kernel(teacher_force, v_real):
    def kernel(y_emb_ref, sen_hid_ref, sen_c_ref,
               enc_x_ref, bias_x_ref, enc_c_ref, bias_c_ref, pmr_ref,
               emb_ref, w_g_ref, b_g_ref,
               w_oh_ref, w_ox_ref, w_oc_ref, b_o_ref,
               logits_ref, attn_pack_ref,
               hid_sc, c_sc, yemb_sc):
        t = pl.program_id(0)
        H2 = hid_sc.shape[-1]
        P3 = pmr_ref.shape[1]
        P = P3 // 3
        Lx = enc_x_ref.shape[1]

        # ---- carry initialisation (decoder state comes from the encoder) ----
        @pl.when(t == 0)
        def _():
            hid_sc[...] = sen_hid_ref[...]
            c_sc[...] = sen_c_ref[...]
            yemb_sc[...] = jnp.zeros_like(yemb_sc)

        hid = hid_sc[...]                                     # (B, H2) f32
        c = c_sc[...]                                         # (B, H2) f32

        # ---- decoder input embedding ----
        y_bf = y_emb_ref[0]                                   # (B, E) bf16 (gt)
        if teacher_force:
            # original semantics: args.teacher_force=True feeds own argmax
            # from step 2 onward (steps 0/1 always use sentence_y[:, 0:2]).
            y_bf = jnp.where(t < 2, y_bf, yemb_sc[...])

        # ---- LSTM cell: single fused gate matmul on concat([y, hid]) ----
        yh = jnp.concatenate([y_bf, hid.astype(jnp.bfloat16)], axis=-1)
        gates = (jnp.dot(yh, w_g_ref[...], preferred_element_type=jnp.float32)
                 + b_g_ref[...])                              # (B, 4H2) f32
        i_g = jax.nn.sigmoid(gates[:, 0 * H2:1 * H2])
        f_g = jax.nn.sigmoid(gates[:, 1 * H2:2 * H2])
        g_g = jnp.tanh(gates[:, 2 * H2:3 * H2])
        o_g = jax.nn.sigmoid(gates[:, 3 * H2:4 * H2])
        c_new = f_g * c + i_g * g_g
        hid_new = o_g * jnp.tanh(c_new)
        hid_bf = hid_new.astype(jnp.bfloat16)

        # ---- masked attention over sentence / context encodings ----
        def masked_attend(enc_bf, bias):
            sc = jnp.einsum('bh,blh->bl', hid_bf, enc_bf,
                            preferred_element_type=jnp.float32) + bias
            sc = sc - jnp.max(sc, axis=-1, keepdims=True)
            e = jnp.exp(sc)
            a = e * pl.reciprocal(jnp.sum(e, axis=-1, keepdims=True),
                                  approx=True)
            ctx = jnp.einsum('bl,blh->bh', a.astype(jnp.bfloat16), enc_bf,
                             preferred_element_type=jnp.float32)
            return a, ctx

        a_x, ctx_x = masked_attend(enc_x_ref[...], bias_x_ref[...])
        _a_c, ctx_c = masked_attend(enc_c_ref[...], bias_c_ref[...])

        # ---- output projection: three accumulating dots (no lane concat) ----
        logits = (jnp.dot(hid_bf, w_oh_ref[...],
                          preferred_element_type=jnp.float32)
                  + jnp.dot(ctx_x.astype(jnp.bfloat16), w_ox_ref[...],
                            preferred_element_type=jnp.float32)
                  + jnp.dot(ctx_c.astype(jnp.bfloat16), w_oc_ref[...],
                            preferred_element_type=jnp.float32)
                  + b_o_ref[...])                             # (B, Vpad) f32
        logits_ref[0] = logits

        # ---- carry update ----
        hid_sc[...] = hid_new
        c_sc[...] = c_new

        # ---- PMR attention + packed attn outputs: only step 0 is returned ----
        @pl.when(t == 0)
        def _():
            sc = jnp.einsum('bh,bph->bp', hid_bf, pmr_ref[...],
                            preferred_element_type=jnp.float32)  # (B, 3P)

            def soft(x):
                x = x - jnp.max(x, axis=-1, keepdims=True)
                e = jnp.exp(x)
                return e * pl.reciprocal(jnp.sum(e, axis=-1, keepdims=True),
                                         approx=True)

            pa = soft(sc[:, 0 * P:1 * P])
            ma = soft(sc[:, 1 * P:2 * P])
            ra = soft(sc[:, 2 * P:3 * P])
            parts = [a_x, pa, ma, ra]
            pad_w = attn_pack_ref.shape[-1] - (Lx + 3 * P)
            if pad_w > 0:
                parts.append(jnp.zeros((a_x.shape[0], pad_w), jnp.float32))
            attn_pack_ref[...] = jnp.concatenate(parts, axis=-1)

        # ---- teacher-force path: greedy feed via one-hot matmul gather ----
        if teacher_force:
            @pl.when(t >= 1)
            def _():
                lane = jax.lax.broadcasted_iota(jnp.int32, logits.shape, 1)
                masked = jnp.where(lane < v_real, logits, -jnp.inf)
                ids = jnp.argmax(masked, axis=-1)             # (B,)
                oh = (jax.lax.broadcasted_iota(
                          jnp.int32, (logits.shape[0], emb_ref.shape[0]), 1)
                      == ids[:, None]).astype(jnp.bfloat16)
                yemb_sc[...] = jnp.dot(
                    oh, emb_ref[...],
                    preferred_element_type=jnp.float32).astype(jnp.bfloat16)

    return kernel


def run_decoder(params, teacher_force, y_embs, sen_hid, sen_c,
                enc_x, bias_x, enc_c, bias_c, pmr_mat):
    T, B, E = y_embs.shape
    H2 = sen_hid.shape[-1]
    Lx = enc_x.shape[1]
    Lc = enc_c.shape[1]
    P3 = pmr_mat.shape[1]
    Vp = params['b_out'].shape[-1]
    Ve = params['embedding'].shape[0]
    pack_w = _round_up(Lx + P3, 128)      # lane-dense packed attn output slab

    kernel = _make_decoder_kernel(teacher_force, params['vocab'])

    grid_spec = pltpu.PrefetchScalarGridSpec(
        num_scalar_prefetch=0,
        grid=(T,),
        in_specs=[
            pl.BlockSpec((1, B, E), lambda t: (t, 0, 0)),       # y_embs (per step)
            pl.BlockSpec((B, H2), lambda t: (0, 0)),            # sen_hid
            pl.BlockSpec((B, H2), lambda t: (0, 0)),            # sen_c
            pl.BlockSpec((B, Lx, H2), lambda t: (0, 0, 0)),     # enc_x (resident)
            pl.BlockSpec((B, Lx), lambda t: (0, 0)),            # bias_x
            pl.BlockSpec((B, Lc, H2), lambda t: (0, 0, 0)),     # enc_c
            pl.BlockSpec((B, Lc), lambda t: (0, 0)),            # bias_c
            pl.BlockSpec((B, P3, H2), lambda t: (0, 0, 0)),     # stacked pmr
            pl.BlockSpec((Ve, E), lambda t: (0, 0)),            # embedding table
            pl.BlockSpec((E + H2, 4 * H2), lambda t: (0, 0)),   # w_gates
            pl.BlockSpec((1, 4 * H2), lambda t: (0, 0)),        # b_gates
            pl.BlockSpec((H2, Vp), lambda t: (0, 0)),           # w_out_h
            pl.BlockSpec((H2, Vp), lambda t: (0, 0)),           # w_out_x
            pl.BlockSpec((H2, Vp), lambda t: (0, 0)),           # w_out_c
            pl.BlockSpec((1, Vp), lambda t: (0, 0)),            # b_out
        ],
        out_specs=(
            pl.BlockSpec((1, B, Vp), lambda t: (t, 0, 0)),      # logits (T,B,Vp)
            pl.BlockSpec((B, pack_w), lambda t: (0, 0)),        # packed attn
        ),
        scratch_shapes=[
            pltpu.VMEM((B, H2), jnp.float32),                   # hid carry
            pltpu.VMEM((B, H2), jnp.float32),                   # cell carry
            pltpu.VMEM((B, E), jnp.bfloat16),                   # fed y_emb (TF)
        ],
    )
    out_shape = (
        jax.ShapeDtypeStruct((T, B, Vp), jnp.float32),
        jax.ShapeDtypeStruct((B, pack_w), jnp.float32),
    )
    return pl.pallas_call(
        kernel,
        out_shape=out_shape,
        grid_spec=grid_spec,
        compiler_params=pltpu.CompilerParams(
            dimension_semantics=("arbitrary",)),   # sequential recurrence over T
    )(y_embs, sen_hid, sen_c, enc_x, bias_x, enc_c, bias_c, pmr_mat,
      params['embedding'],
      params['w_gates'], params['b_gates'],
      params['w_out_h'], params['w_out_x'], params['w_out_c'],
      params['b_out'])


# ----------------------------------------------------------------------------
# PreStory forward (PyTorch control flow reproduced; args.context=True,
# args.encoder_merge=False, args.self_attention=False, args.gpt2=False)
# ----------------------------------------------------------------------------
def create_mask(src, word_dict):
    # args.gpt2 == False branch: mask = src != word_dict['pad']
    return (src != word_dict['pad']).astype(jnp.float32)


def pre_story_forward(params, word_dict,
                      switch, sentence_x, sentence_x_len, context_x,
                      context_x_len, char_idx, p_id, m_id, r_id,
                      p_score, m_score, r_score,
                      sentence_y, sentence_y_lenth, epoch, it,
                      teacher_force=False):
    del switch, sentence_x_len, context_x_len, char_idx, sentence_y_lenth
    del epoch, it

    emb = params['embedding']                                  # (Vpad, E) bf16
    emb_x = jnp.take(emb, sentence_x, axis=0)
    emb_c = jnp.take(emb, context_x, axis=0)
    pmr_id = jnp.concatenate([p_id, m_id, r_id], axis=1)       # (B, 3P)
    pmr_emb = jnp.take(emb, pmr_id, axis=0)
    pmr_score = jnp.concatenate([p_score, m_score, r_score],
                                axis=1).astype(jnp.float32)

    mask_x = create_mask(sentence_x, word_dict)
    mask_c = create_mask(context_x, word_dict)

    (x_sen, sen_hid, sen_c, x_con, pmr_mat) = run_encoder(
        params, emb_x, emb_c, pmr_emb, pmr_score, mask_x)
    # TODO(synk): selfattn_out_sen / selfattn_out_con (injected encoder
    # self-attention) have no stand-alone spec — not reproduced.

    # args.context=True, args.gpt2=False, args.encoder_merge=False:
    # decoder state <- pooled encoder, attend over x_sen (mask from sentence_x)
    # and x_con (mask from context_x).  Masks pre-converted to additive bias.
    bias_x = (1.0 - mask_x) * jnp.float32(-1e9)
    bias_c = (1.0 - mask_c) * jnp.float32(-1e9)

    # Ground-truth decoder-input embeddings for every step, (T, B, E),
    # pipelined into the fused kernel one step-block at a time.
    y_embs = jnp.take(emb, jnp.transpose(sentence_y), axis=0)

    logits_tbv, attn_pack = run_decoder(
        params, teacher_force, y_embs, sen_hid, sen_c,
        x_sen, bias_x, x_con, bias_c, pmr_mat)

    V = params['vocab']
    decoder_out = jnp.transpose(logits_tbv, (1, 0, 2))[:, :, :V]   # (B, T, V)
    Lx = sentence_x.shape[1]
    P = p_id.shape[1]
    attn = attn_pack[:, :Lx]                       # step-0 sentence attention
    p_attn_score = attn_pack[:, Lx:Lx + P]         # step-0 p/m/r scores
    m_attn_score = attn_pack[:, Lx + P:Lx + 2 * P]
    r_attn_score = attn_pack[:, Lx + 2 * P:Lx + 3 * P]
    return decoder_out, attn, p_attn_score, m_attn_score, r_attn_score


# ----------------------------------------------------------------------------
# Deterministic parameter init (shapes implied by __init__ / synthetic subnets)
# ----------------------------------------------------------------------------
def init_params(key, vocab, embed_dim, hidden_size, pmr_size):
    del pmr_size
    H2 = hidden_size * 2
    E = embed_dim
    Vp = _round_up(vocab, 128)                     # lane-dense padded vocab
    ks = jax.random.split(key, 12)
    s = 0.1

    def nrm(k, shape):
        return s * jax.random.normal(k, shape, jnp.float32)

    def pad_cols(x, target):
        return jnp.pad(x, ((0, 0), (0, target - x.shape[-1])))

    emb = jnp.pad(nrm(ks[0], (vocab, E)), ((0, Vp - vocab), (0, 0)))

    params = {
        'vocab': vocab,
        'embedding': emb.astype(jnp.bfloat16),                       # (Vp, E)
        'w_enc_x': nrm(ks[1], (E, H2)).astype(jnp.bfloat16),
        'b_enc_x': jnp.zeros((1, H2), jnp.float32),
        'w_enc_c': nrm(ks[2], (E, H2)).astype(jnp.bfloat16),
        'b_enc_c': jnp.zeros((1, H2), jnp.float32),
        'w_pmr': nrm(ks[3], (E, H2)).astype(jnp.bfloat16),
        'b_pmr': jnp.zeros((1, H2), jnp.float32),
        # fused LSTM gate weights: rows [0:E] input, rows [E:E+H2] hidden
        'w_gates': nrm(ks[4], (E + H2, 4 * H2)).astype(jnp.bfloat16),
        'b_gates': jnp.zeros((1, 4 * H2), jnp.float32),
        # output projection split into three (H2, Vpad) blocks
        'w_out_h': pad_cols(nrm(ks[5], (H2, vocab)), Vp).astype(jnp.bfloat16),
        'w_out_x': pad_cols(nrm(ks[6], (H2, vocab)), Vp).astype(jnp.bfloat16),
        'w_out_c': pad_cols(nrm(ks[7], (H2, vocab)), Vp).astype(jnp.bfloat16),
        'b_out': jnp.zeros((1, Vp), jnp.float32),
        # PreStory.__init__ defines char_fc = Linear(hidden_size, hidden_size*2)
        # but it is never used in forward(); kept for shape fidelity.
        'char_fc_w': nrm(ks[8], (hidden_size, H2)),
        'char_fc_b': jnp.zeros((1, H2), jnp.float32),
    }
    return params


# ----------------------------------------------------------------------------
if __name__ == "__main__":
    key = jax.random.PRNGKey(0)
    B, Lx, Lc, T = 8, 8, 8, 8
    V, E, H, P = 120, 128, 64, 4          # vocab padded to 128 internally
    word_dict = {'pad': 0, 'bos': 1, 'eos': 2}

    ks = jax.random.split(key, 9)

    sentence_x = jax.random.randint(ks[0], (B, Lx), 3, V, dtype=jnp.int32)
    sentence_x = sentence_x.at[:, -1].set(word_dict['pad'])   # exercise mask
    context_x = jax.random.randint(ks[1], (B, Lc), 3, V, dtype=jnp.int32)
    context_x = context_x.at[:, -2:].set(word_dict['pad'])
    sentence_y = jax.random.randint(ks[2], (B, T), 3, V, dtype=jnp.int32)
    sentence_y = sentence_y.at[:, 0].set(word_dict['bos'])

    p_id = jax.random.randint(ks[3], (B, P), 3, V, dtype=jnp.int32)
    m_id = jax.random.randint(ks[4], (B, P), 3, V, dtype=jnp.int32)
    r_id = jax.random.randint(ks[5], (B, P), 3, V, dtype=jnp.int32)
    p_score = jax.random.uniform(ks[6], (B, P), jnp.float32)
    m_score = jax.random.uniform(ks[7], (B, P), jnp.float32)
    r_score = jnp.ones((B, P), jnp.float32)

    sentence_x_len = jnp.full((B,), Lx - 1, jnp.int32)
    context_x_len = jnp.full((B,), Lc - 2, jnp.int32)
    sentence_y_len = jnp.full((B,), T, jnp.int32)
    char_idx = jnp.zeros((B, 2), jnp.int32)

    params = init_params(ks[8], V, E, H, P)

    out = pre_story_forward(
        params, word_dict,
        0, sentence_x, sentence_x_len, context_x, context_x_len,
        char_idx, p_id, m_id, r_id, p_score, m_score, r_score,
        sentence_y, sentence_y_len, 0, 0,
        teacher_force=False)

    decoder_out, attn, p_attn, m_attn, r_attn = out
    jax.block_until_ready(decoder_out)
    jax.block_until_ready(attn)
    jax.block_until_ready(p_attn)
    assert decoder_out.shape == (B, T, V)
    assert attn.shape == (B, Lx)
    assert p_attn.shape == (B, P)
    assert m_attn.shape == (B, P)
    assert r_attn.shape == (B, P)
    assert bool(jnp.all(jnp.isfinite(decoder_out)))
    print("KERNEL_OK")
</pallas_src>

<mosaic_0001>
module attributes {stable_mosaic.version = 11 : i64} {
  func.func @_encoder_kernel(%arg0: memref<8x8x128xbf16, #tpu.memory_space<vmem>>, %arg1: memref<8x8x128xbf16, #tpu.memory_space<vmem>>, %arg2: memref<8x12x128xbf16, #tpu.memory_space<vmem>>, %arg3: memref<8x12xf32, #tpu.memory_space<vmem>>, %arg4: memref<8x8xf32, #tpu.memory_space<vmem>>, %arg5: memref<128x128xbf16, #tpu.memory_space<vmem>>, %arg6: memref<1x128xf32, #tpu.memory_space<vmem>>, %arg7: memref<128x128xbf16, #tpu.memory_space<vmem>>, %arg8: memref<1x128xf32, #tpu.memory_space<vmem>>, %arg9: memref<128x128xbf16, #tpu.memory_space<vmem>>, %arg10: memref<1x128xf32, #tpu.memory_space<vmem>>, %arg11: memref<8x8x128xbf16, #tpu.memory_space<vmem>>, %arg12: memref<8x128xf32, #tpu.memory_space<vmem>>, %arg13: memref<8x128xf32, #tpu.memory_space<vmem>>, %arg14: memref<8x8x128xbf16, #tpu.memory_space<vmem>>, %arg15: memref<8x12x128xbf16, #tpu.memory_space<vmem>>) attributes {dimension_semantics = [], scalar_prefetch = 0 : i64, scratch_operands = 0 : i64, tpu.core_type = #tpu.core_type<tc>} {
    %c0 = arith.constant 0 : index
    %c0_0 = arith.constant 0 : index
    %c0_1 = arith.constant 0 : index
    %0 = vector.load %arg0[%c0, %c0_0, %c0_1] : memref<8x8x128xbf16, #tpu.memory_space<vmem>>, vector<8x8x128xbf16>
    %c0_2 = arith.constant 0 : index
    %c0_3 = arith.constant 0 : index
    %1 = vector.load %arg5[%c0_2, %c0_3] : memref<128x128xbf16, #tpu.memory_space<vmem>>, vector<128x128xbf16>
    "tpu.trace_start"() <{level = 10 : i32, message = "ble,eh->blh"}> : () -> ()
    %cst = arith.constant dense<0.000000e+00> : vector<8x8x128xf32>
    %2 = tpu.matmul %0, %1, %cst {dimension_numbers = #tpu.dot_dimension_numbers<[2], [0], [0, 1], [1], [0, 0, 0, 1, 1, 1], [], []>} : vector<8x8x128xbf16>, vector<128x128xbf16>, vector<8x8x128xf32> -> vector<8x8x128xf32>
    "tpu.trace_stop"() : () -> ()
    %c0_4 = arith.constant 0 : index
    %c0_5 = arith.constant 0 : index
    %3 = vector.load %arg6[%c0_4, %c0_5] : memref<1x128xf32, #tpu.memory_space<vmem>>, vector<1x128xf32>
    %4 = vector.shape_cast %3 : vector<1x128xf32> to vector<1x1x128xf32>
    %5 = vector.broadcast %4 : vector<1x1x128xf32> to vector<8x8x128xf32>
    %6 = arith.addf %2, %5 : vector<8x8x128xf32>
    %7 = math.tanh %6 : vector<8x8x128xf32>
    %8 = arith.truncf %7 : vector<8x8x128xf32> to vector<8x8x128xbf16>
    %c0_6 = arith.constant 0 : index
    %c0_7 = arith.constant 0 : index
    %c0_8 = arith.constant 0 : index
    %9 = vector.load %arg11[%c0_6, %c0_7, %c0_8] : memref<8x8x128xbf16, #tpu.memory_space<vmem>>, vector<8x8x128xbf16>
    tpu.vector_store %arg11[%c0_6, %c0_7, %c0_8], %8 {strides = array<i32>} : memref<8x8x128xbf16, #tpu.memory_space<vmem>>, vector<8x8x128xbf16>,
    %c0_9 = arith.constant 0 : index
    %c0_10 = arith.constant 0 : index
    %10 = vector.load %arg4[%c0_9, %c0_10] : memref<8x8xf32, #tpu.memory_space<vmem>>, vector<8x8xf32>
    %cst_11 = arith.constant dense<0.000000e+00> : vector<8xf32>
    %11 = vector.multi_reduction <add>, %10, %cst_11 [1] : vector<8x8xf32> to vector<8xf32>
    %12 = vector.shape_cast %11 : vector<8xf32> to vector<8x1xf32>
    %cst_12 = arith.constant 1.000000e+00 : f32
    %13 = vector.broadcast %cst_12 : f32 to vector<8x1xf32>
    %14 = arith.maximumf %12, %13 : vector<8x1xf32>
    %15 = vector.shape_cast %10 : vector<8x8xf32> to vector<8x8x1xf32>
    %16 = vector.broadcast %15 : vector<8x8x1xf32> to vector<8x8x128xf32>
    %17 = arith.mulf %7, %16 : vector<8x8x128xf32>
    %cst_13 = arith.constant dense<0.000000e+00> : vector<8x128xf32>
    %18 = vector.multi_reduction <add>, %17, %cst_13 [1] : vector<8x8x128xf32> to vector<8x128xf32>
    %19 = vector.broadcast %14 : vector<8x1xf32> to vector<8x128xf32>
    %20 = arith.divf %18, %19 : vector<8x128xf32>
    %21 = math.tanh %20 : vector<8x128xf32>
    %c0_14 = arith.constant 0 : index
    %c0_15 = arith.constant 0 : index
    %22 = vector.load %arg12[%c0_14, %c0_15] : memref<8x128xf32, #tpu.memory_space<vmem>>, vector<8x128xf32>
    tpu.vector_store %arg12[%c0_14, %c0_15], %21 {strides = array<i32>} : memref<8x128xf32, #tpu.memory_space<vmem>>, vector<8x128xf32>,
    %c0_16 = arith.constant 0 : index
    %c0_17 = arith.constant 0 : index
    %23 = vector.load %arg13[%c0_16, %c0_17] : memref<8x128xf32, #tpu.memory_space<vmem>>, vector<8x128xf32>
    tpu.vector_store %arg13[%c0_16, %c0_17], %20 {strides = array<i32>} : memref<8x128xf32, #tpu.memory_space<vmem>>, vector<8x128xf32>,
    %c0_18 = arith.constant 0 : index
    %c0_19 = arith.constant 0 : index
    %c0_20 = arith.constant 0 : index
    %24 = vector.load %arg1[%c0_18, %c0_19, %c0_20] : memref<8x8x128xbf16, #tpu.memory_space<vmem>>, vector<8x8x128xbf16>
    %c0_21 = arith.constant 0 : index
    %c0_22 = arith.constant 0 : index
    %25 = vector.load %arg7[%c0_21, %c0_22] : memref<128x128xbf16, #tpu.memory_space<vmem>>, vector<128x128xbf16>
    "tpu.trace_start"() <{level = 10 : i32, message = "ble,eh->blh"}> : () -> ()
    %cst_23 = arith.constant dense<0.000000e+00> : vector<8x8x128xf32>
    %26 = tpu.matmul %24, %25, %cst_23 {dimension_numbers = #tpu.dot_dimension_numbers<[2], [0], [0, 1], [1], [0, 0, 0, 1, 1, 1], [], []>} : vector<8x8x128xbf16>, vector<128x128xbf16>, vector<8x8x128xf32> -> vector<8x8x128xf32>
    "tpu.trace_stop"() : () -> ()
    %c0_24 = arith.constant 0 : index
    %c0_25 = arith.constant 0 : index
    %27 = vector.load %arg8[%c0_24, %c0_25] : memref<1x128xf32, #tpu.memory_space<vmem>>, vector<1x128xf32>
    %28 = vector.shape_cast %27 : vector<1x128xf32> to vector<1x1x128xf32>
    %29 = vector.broadcast %28 : vector<1x1x128xf32> to vector<8x8x128xf32>
    %30 = arith.addf %26, %29 : vector<8x8x128xf32>
    %31 = math.tanh %30 : vector<8x8x128xf32>
    %32 = arith.truncf %31 : vector<8x8x128xf32> to vector<8x8x128xbf16>
    %c0_26 = arith.constant 0 : index
    %c0_27 = arith.constant 0 : index
    %c0_28 = arith.constant 0 : index
    %33 = vector.load %arg14[%c0_26, %c0_27, %c0_28] : memref<8x8x128xbf16, #tpu.memory_space<vmem>>, vector<8x8x128xbf16>
    tpu.vector_store %arg14[%c0_26, %c0_27, %c0_28], %32 {strides = array<i32>} : memref<8x8x128xbf16, #tpu.memory_space<vmem>>, vector<8x8x128xbf16>,
    %c0_29 = arith.constant 0 : index
    %c0_30 = arith.constant 0 : index
    %c0_31 = arith.constant 0 : index
    %34 = vector.load %arg2[%c0_29, %c0_30, %c0_31] : memref<8x12x128xbf16, #tpu.memory_space<vmem>>, vector<8x12x128xbf16>
    %c0_32 = arith.constant 0 : index
    %c0_33 = arith.constant 0 : index
    %35 = vector.load %arg9[%c0_32, %c0_33] : memref<128x128xbf16, #tpu.memory_space<vmem>>, vector<128x128xbf16>
    "tpu.trace_start"() <{level = 10 : i32, message = "bpe,eh->bph"}> : () -> ()
    %cst_34 = arith.constant dense<0.000000e+00> : vector<8x12x128xf32>
    %36 = tpu.matmul %34, %35, %cst_34 {dimension_numbers = #tpu.dot_dimension_numbers<[2], [0], [0, 1], [1], [0, 0, 0, 1, 1, 1], [], []>} : vector<8x12x128xbf16>, vector<128x128xbf16>, vector<8x12x128xf32> -> vector<8x12x128xf32>
    "tpu.trace_stop"() : () -> ()
    %c0_35 = arith.constant 0 : index
    %c0_36 = arith.constant 0 : index
    %37 = vector.load %arg10[%c0_35, %c0_36] : memref<1x128xf32, #tpu.memory_space<vmem>>, vector<1x128xf32>
    %38 = vector.shape_cast %37 : vector<1x128xf32> to vector<1x1x128xf32>
    %39 = vector.broadcast %38 : vector<1x1x128xf32> to vector<8x12x128xf32>
    %40 = arith.addf %36, %39 : vector<8x12x128xf32>
    %41 = math.tanh %40 : vector<8x12x128xf32>
    %c0_37 = arith.constant 0 : index
    %c0_38 = arith.constant 0 : index
    %42 = vector.load %arg3[%c0_37, %c0_38] : memref<8x12xf32, #tpu.memory_space<vmem>>, vector<8x12xf32>
    %43 = vector.shape_cast %42 : vector<8x12xf32> to vector<8x12x1xf32>
    %44 = vector.broadcast %43 : vector<8x12x1xf32> to vector<8x12x128xf32>
    %45 = arith.mulf %41, %44 : vector<8x12x128xf32>
    %46 = arith.truncf %45 : vector<8x12x128xf32> to vector<8x12x128xbf16>
    %c0_39 = arith.constant 0 : index
    %c0_40 = arith.constant 0 : index
    %c0_41 = arith.constant 0 : index
    %47 = vector.load %arg15[%c0_39, %c0_40, %c0_41] : memref<8x12x128xbf16, #tpu.memory_space<vmem>>, vector<8x12x128xbf16>
    tpu.vector_store %arg15[%c0_39, %c0_40, %c0_41], %46 {strides = array<i32>} : memref<8x12x128xbf16, #tpu.memory_space<vmem>>, vector<8x12x128xbf16>,
    return
  }
}

</mosaic_0001>

<bundles_post_ra>
// kernel: tpu_custom_call.1
= control target key start
LH: loop header
LB: loop body
LE: loop exit
PB: predicated region body
PF: predicated region fallthrough
CT: control target
= control target key end

     0   :  { %21 = vsyncpa [#allocation3], 0  ;;  %s3051_s0 = inlined_call_operand.hbm [shape: bf16[8,8,128], index: 0, kind: input, shape index: {}]   ;;  %s3052_s1 = inlined_call_operand.hbm [shape: bf16[8,8,128], index: 1, kind: input, shape index: {}]   ;;  %s3053_s2 = inlined_call_operand.vmem [shape: bf16[8,12,128], index: 2, kind: input, shape index: {}]   ;;  %s3054_s3 = inlined_call_operand.hbm [shape: f32[8,12], index: 3, kind: input, shape index: {}]   ;;  %s3055_s4 = inlined_call_operand.hbm [shape: f32[8,8], index: 4, kind: input, shape index: {}]   ;;  %s3056_s5 = inlined_call_operand.vmem [shape: bf16[128,128], index: 5, kind: input, shape index: {}]   ;;  %s3057_s6 = inlined_call_operand.hbm [shape: f32[1,128], index: 6, kind: input, shape index: {}]   ;;  %s3058_s7 = inlined_call_operand.hbm [shape: bf16[128,128], index: 7, kind: input, shape index: {}]   ;;  %s3059_s8 = inlined_call_operand.hbm [shape: f32[1,128], index: 8, kind: input, shape index: {}]   ;;  %s3060_s9 = inlined_call_operand.vmem [shape: bf16[128,128], index: 9, kind: input, shape index: {}]   ;;  %s3061_s10 = inlined_call_operand.vmem [shape: f32[1,128], index: 10, kind: input, shape index: {}]   ;;  %s3062_s11 = inlined_call_operand.hbm [shape: bf16[8,8,128], index: 11, kind: output, shape index: {0}]   ;;  %s3063_s12 = inlined_call_operand.hbm [shape: f32[8,128], index: 12, kind: output, shape index: {1}]   ;;  %s3064_s13 = inlined_call_operand.hbm [shape: f32[8,128], index: 13, kind: output, shape index: {2}]   ;;  %s3065_s14 = inlined_call_operand.hbm [shape: bf16[8,8,128], index: 14, kind: output, shape index: {3}]   ;;  %s3066_s15 = inlined_call_operand.vmem [shape: bf16[8,12,128], index: 15, kind: output, shape index: {4}]  }
   0x1   :  { %22 = vsyncpa [#allocation6], 0 }
   0x2   :  { %23 = vsyncpa [#allocation9], 0 }
   0x3   :  { %24 = vsyncpa [#allocation12], 0 }
   0x4   :  { %25 = vsyncpa [#allocation4], 0 }
   0x5   :  { %26 = vsyncpa [#allocation16], 0 }
   0x6   :  { %27 = vsyncpa [#allocation19], 0  ;;  %s2346_s18 = smov [#allocation5]   ;;  %s2347_s20 = smov [#allocation8]  }
   0x7   :  { %s45_s19 = sshll.u32 %s2346_s18, 4  ;;  %s70_s21 = sshll.u32 %s2347_s20, 4  ;;  %s46_s19 = int_to_ptr.vmem [resolvable:$true] %s45_s19  ;;  %s71_s21 = int_to_ptr.vmem [resolvable:$true] %s70_s21 }
   0x8   :  { %s2120_s22 = scalar_lea.vmem %s46_s19, 512  ;;  %p2125_p1 = scmp.lt.s32.totalorder %s46_s19, %s46_s19 }
   0x9   :  { %p2121_p0 = scmp.ne.s32.totalorder %s46_s19, %s2120_s22  ;;  %p2126_p2 = scmp.lt.s32.totalorder %s2120_s22, %s2120_s22 }
   0xb   :  { %p2127_p3 = por %p2126_p2, %p2125_p1 }
   0xd   :  { %p2128_p4 = pnand %p2127_p3, %p2121_p0 }
   0xf   :  { %2131 = shalt.err (!%p2128_p4)
}
  0x10   :  { %s2348_s23 = smov 64   ;;  %s2349_s24 = smov 4  }
  0x11   :  { %51 = dma.hbm_to_vmem [thread:$0]  %s3052_s1, 512, %s46_s19, [#allocation6], %s2348_s23, %s2348_s23, %s2349_s24  }
  0x12   :  { %s2140_s27 = scalar_lea.vmem %s71_s21, 128  ;;  %p2145_p6 = scmp.lt.s32.totalorder %s71_s21, %s71_s21 }
  0x13   :  { %p2141_p5 = scmp.ne.s32.totalorder %s71_s21, %s2140_s27  ;;  %p2146_p7 = scmp.lt.s32.totalorder %s2140_s27, %s2140_s27 }
  0x15   :  { %p2147_p8 = por %p2146_p7, %p2145_p6 }
  0x17   :  { %p2148_p9 = pnand %p2147_p8, %p2141_p5 }
  0x19   :  { %2151 = shalt.err (!%p2148_p9)
}
  0x1a   :  { %73 = dma.hbm_to_vmem [thread:$0]  %s3055_s4, 128, %s71_s21, [#allocation9]  }
  0x1b   :  { %s2350_s30 = smov [#allocation11]   ;;  %s2351_s17 = smov [#allocation2]  }
  0x1c   :  { %s91_s16 = sshll.u32 %s2350_s30, 4  ;;  %s33_s18 = sshll.u32 %s2351_s17, 4  ;;  %s92_s16 = int_to_ptr.vmem [resolvable:$true] %s91_s16  ;;  %s34_s18 = int_to_ptr.vmem [resolvable:$true] %s33_s18 }
  0x1d   :  { %s2160_s20 = scalar_lea.vmem %s92_s16, 1024  ;;  %p2165_p11 = scmp.lt.s32.totalorder %s92_s16, %s92_s16 }
  0x1e   :  { %p2161_p10 = scmp.ne.s32.totalorder %s92_s16, %s2160_s20  ;;  %p2166_p12 = scmp.lt.s32.totalorder %s2160_s20, %s2160_s20 }
  0x20   :  { %p2167_p13 = por %p2166_p12, %p2165_p11 }
  0x22   :  { %p2168_p0 = pnand %p2167_p13, %p2161_p10 }
  0x24   :  { %2171 = shalt.err (!%p2168_p0)
}
  0x25   :  { %97 = dma.hbm_to_vmem [thread:$0]  %s3058_s7, 1024, %s92_s16, [#allocation12], %s2348_s23, %s2348_s23, %s2349_s24  }
  0x26   :  { %s2180_s4 = scalar_lea.vmem %s34_s18, 512  ;;  %p2185_p2 = scmp.lt.s32.totalorder %s34_s18, %s34_s18 }
  0x27   :  { %p2181_p1 = scmp.ne.s32.totalorder %s34_s18, %s2180_s4  ;;  %p2186_p3 = scmp.lt.s32.totalorder %s2180_s4, %s2180_s4 }
  0x29   :  { %p2187_p4 = por %p2186_p3, %p2185_p2 }
  0x2b   :  { %p2188_p5 = pnand %p2187_p4, %p2181_p1 }
  0x2d   :  { %2191 = shalt.err (!%p2188_p5)
}
  0x2e   :  { %39 = dma.hbm_to_vmem [thread:$0]  %s3051_s0, 512, %s34_s18, [#allocation3], %s2348_s23, %s2348_s23, %s2349_s24  }
  0x2f   :  { %s2352_s25 = smov [#allocation7]   ;;  %s2353_s27 = smov [#allocation10]  }
  0x30   :  { %s60_s26 = sshll.u32 %s2352_s25, 4  ;;  %s82_s28 = sshll.u32 %s2353_s27, 4  ;;  %s61_s26 = int_to_ptr.vmem [resolvable:$true] %s60_s26  ;;  %s83_s28 = int_to_ptr.vmem [resolvable:$true] %s82_s28 }
  0x31   :  { %s2200_s7 = scalar_lea.vmem %s61_s26, 128  ;;  %p2205_p7 = scmp.lt.s32.totalorder %s61_s26, %s61_s26 }
  0x32   :  { %p2201_p6 = scmp.ne.s32.totalorder %s61_s26, %s2200_s7  ;;  %p2206_p8 = scmp.lt.s32.totalorder %s2200_s7, %s2200_s7 }
  0x34   :  { %p2207_p9 = por %p2206_p8, %p2205_p7 }
  0x36   :  { %p2208_p10 = pnand %p2207_p9, %p2201_p6 }
  0x38   :  { %2211 = shalt.err (!%p2208_p10)
}
  0x39   :  { %63 = dma.hbm_to_vmem [thread:$0]  %s3054_s3, 128, %s61_s26, [#allocation6]  }
  0x3a   :  { %s2220_s16 = scalar_lea.vmem %s83_s28, 16  ;;  %s2224_s0 = scalar_lea.vmem %s83_s28, 32 }
  0x3b   :  { %p2221_p11 = scmp.ne.s32.totalorder %s83_s28, %s2220_s16  ;;  %p2225_p12 = scmp.lt.s32.totalorder %s83_s28, %s83_s28 }
  0x3c   :  { %p2226_p13 = scmp.lt.s32.totalorder %s2224_s0, %s2220_s16 }
  0x3e   :  { %p2227_p0 = por %p2226_p13, %p2225_p12 }
  0x40   :  { %p2228_p1 = pnand %p2227_p0, %p2221_p11 }
  0x42   :  { %2231 = shalt.err (!%p2228_p1)
}
  0x43   :  { %85 = dma.hbm_to_vmem [thread:$0]  %s3057_s6, 16, %s83_s28, [#allocation9]  }
  0x44   :  { %s2354_s20 = smov [#allocation13]  }
  0x45   :  { %s104_s1 = sshll.u32 %s2354_s20, 4  ;;  %s105_s1 = int_to_ptr.vmem [resolvable:$true] %s104_s1 }
  0x46   :  { %s2240_s19 = scalar_lea.vmem %s105_s1, 16  ;;  %s2244_s4 = scalar_lea.vmem %s105_s1, 32 }
  0x47   :  { %p2241_p2 = scmp.ne.s32.totalorder %s105_s1, %s2240_s19  ;;  %p2245_p3 = scmp.lt.s32.totalorder %s105_s1, %s105_s1 }
  0x48   :  { %p2246_p4 = scmp.lt.s32.totalorder %s2244_s4, %s2240_s19 }
  0x4a   :  { %p2247_p5 = por %p2246_p4, %p2245_p3 }
  0x4c   :  { %p2248_p6 = pnand %p2247_p5, %p2241_p2 }
  0x4e   :  { %2251 = shalt.err (!%p2248_p6)
}
  0x4f   :  { %107 = dma.hbm_to_vmem [thread:$0]  %s3059_s8, 16, %s105_s1, [#allocation12]  }
  0x50   :  { %2332 = dma.done.wait [#allocation3], 512  }
  0x51   :  { %2333 = vsyncadd [#allocation3], 4294966784 }
  0x52   :  { %2334 = dma.done.wait [#allocation6], 640  }
  0x53   :  { %2335 = vsyncadd [#allocation6], 4294966656 }
  0x54   :  { %2336 = dma.done.wait [#allocation9], 144  }
  0x55   :  { %2337 = vsyncadd [#allocation9], 4294967152 }
  0x56   :  { %2338 = dma.done.wait [#allocation12], 1040  }
  0x57   :  { %2339 = vsyncadd [#allocation12], 4294966256  ;;  %v1968_v0 = vld [vmem:[%s3056_s5 + $0x38] sm:$0xff]   ;;  %v1969_v1 = vld [vmem:[%s3056_s5 + $0x30] sm:$0xff]   ;;  %v332_v10 = vlaneseq  ;;  %v2355_v11 = vmov 1983009808  }
  0x58   :  { %1876 = vmatprep.subr.bf16.mxu1 %v1968_v0  ;;  %v1970_v2 = vld [vmem:[%s3060_s9 + $0x38] sm:$0xff]   ;;  %v1971_v3 = vld [vmem:[%s3056_s5 + $0x28] sm:$0xff]   ;;  %v1972_v4 = vld [vmem:[%s3060_s9 + $0x30] sm:$0xff]   ;;  %v909_v12 = vunpack.c.l.s4 %v2355_v11  ;;  %vm327_vm0 = vcmask 64512   ;;  %vm493_vm1 = vcmask 1041409   ;;  %vm496_vm2 = vcmask 1042434  }
  0x59   :  { %1877 = vmatpush3.bf16.msra.mxu1 %v1968_v0  ;;  %1924 = vmatprep.subr.bf16.mxu0 %v1970_v2  ;;  %v1974_v5 = vld [vmem:[%s3060_s9 + $0x28] sm:$0xff]   ;;  %v1973_v6 = vld [vmem:[%s3056_s5 + $0x20] sm:$0xff]   ;;  %v1975_v8 = vld [vmem:[%s3056_s5 + $0x18] sm:$0xff]   ;;  %v2505_v15 = vshrl.u32 %v332_v10, 7  ;;  %vm499_vm3 = vcmask 1043459   ;;  %vm502_vm4 = vcmask 1044484  }
  0x5a   :  { %1878 = vmatprep.subr.bf16.mxu1 %v1969_v1  ;;  %1925 = vmatpush3.bf16.msra.mxu0 %v1970_v2  ;;  %v1976_v7 = vld [vmem:[%s3060_s9 + $0x20] sm:$0xff]   ;;  %v1978_v9 = vld [vmem:[%s3060_s9 + $0x18] sm:$0xff]   ;;  %v1977_v14 = vld [vmem:[%s3056_s5 + $0x10] sm:$0xff]   ;;  %v910_v16 = vunpack.c.0.s8 %v909_v12  ;;  %vm505_vm5 = vcmask 1045509  }
  0x5b   :  { %1926 = vmatprep.subr.bf16.mxu0 %v1972_v4  ;;  %v1982_v13 = vld [vmem:[#allocation2] sm:$0xff]   ;;  %v1980_v17 = vld [vmem:[%s3060_s9 + $0x10] sm:$0xff]   ;;  %v1979_v18 = vld [vmem:[%s3056_s5 + $0x8] sm:$0xff]   ;;  %v348_v11 = vsub.s32 2, %v2505_v15 }
  0x5c   :  { %1892 = vmatprep.mubr.bf16.mxu1 %v1982_v13  ;;  %v1736_v19 = vld.sshfl [vmem:[%s3053_s2] sm:$0x33 pattern:$0x76325410]  ;;  %v2520_v22 = vsub.s32 %v910_v16, %v2505_v15  ;;  %v1983_v24 = vld [vmem:[%s3060_s9 + $0x8] sm:$0xff]   ;;  %v1988_v43 = vld [vmem:[#allocation2 + $0x10] sm:$0xff]  }
  0x5d   :  { %1879 = vmatpush3.bf16.msra.mxu1 %v1969_v1  ;;  %v1737_v20 = vld.sshfl [vmem:[%s3053_s2 + $0x4] sm:$0x3 pattern:$0x76325410]  ;;  %v792_v21 = vcombine.high %v1736_v19, %v1736_v19  ;;  %v1985_v35 = vld [vmem:[#allocation11 + $0x38] sm:$0xff]   ;;  %v1990_v61 = vld [vmem:[#allocation11 + $0x28] sm:$0xff]  }
  0x5e   :  { %1880 = vmatprep.subr.bf16.mxu1 %v1971_v3  ;;  %1927 = vmatpush3.bf16.msra.mxu0 %v1972_v4  ;;  %v1981_v23 = vld [vmem:[%s3056_s5] sm:$0xff]   ;;  %v1738_v25 = vld.sshfl [vmem:[%s3053_s2 + $0x8] sm:$0x33 pattern:$0x76325410]  ;;  %v1991_v13 = vld [vmem:[#allocation11 + $0x20] sm:$0xff]  }
  0x5f   :  { %1928 = vmatprep.subr.bf16.mxu0 %v1974_v5  ;;  %v807_v26 = vcombine.high %v1738_v25, %v1738_v25  ;;  %v906_v27 = vcombine.low %v1736_v19, %v792_v21  ;;  %v907_v28 = vcombine.low %v1737_v20, %v1738_v25  ;;  %v1739_v29 = vld.sshfl [vmem:[%s3053_s2 + $0xc] sm:$0x3 pattern:$0x76325410]  ;;  %v1986_v36 = vld [vmem:[%s3060_s9] sm:$0xff]   ;;  %s2358_s5 = smov [#allocation14]  }
  0x60   :  { %v1740_v30 = vld.sshfl [vmem:[%s3053_s2 + $0x10] sm:$0x33 pattern:$0x76325410]  ;;  %v1984_v42 = vld [vmem:[#allocation2 + $0x8] sm:$0xff]   ;;  %v1996_v12 = vld [vmem:[#allocation5] sm:$0xff]  }
  0x61   :  { %1881 = vmatpush3.bf16.msra.mxu1 %v1971_v3  ;;  %v914_v31 = vrot.slane %v906_v27, %v2520_v22  ;;  %v921_v32 = vrot.slane %v907_v28, %v2520_v22  ;;  %v822_v33 = vcombine.high %v1740_v30, %v1740_v30  ;;  %v923_v34 = vcombine.low %v807_v26, %v1739_v29  ;;  %v1741_v39 = vld.sshfl [vmem:[%s3053_s2 + $0x14] sm:$0x3 pattern:$0x76325410]  ;;  %v1987_v48 = vld [vmem:[#allocation11 + $0x30] sm:$0xff]   ;;  %v1992_v25 = vld [vmem:[#allocation11 + $0x18] sm:$0xff]  }
  0x62   :  { %1882 = vmatprep.subr.bf16.mxu1 %v1973_v6  ;;  %1929 = vmatpush3.bf16.msra.mxu0 %v1974_v5  ;;  %v1742_v41 = vld.sshfl [vmem:[%s3053_s2 + $0x18] sm:$0x33 pattern:$0x76325410]  ;;  %v326_v19 = vld [vmem:[#allocation8] sm:$0xff]  ;;  %v355_v29 = vsub.s32 3, %v2505_v15 }
  0x63   :  { %1930 = vmatprep.subr.bf16.mxu0 %v1976_v7  ;;  %v922_v37 = vcombine.low %v914_v31, %v921_v32  ;;  %v924_v38 = vcombine.low %v1740_v30, %v822_v33  ;;  %v931_v40 = vrot.slane %v923_v34, %v2520_v22  ;;  %v1743_v45 = vld.sshfl [vmem:[%s3053_s2 + $0x1c] sm:$0x3 pattern:$0x76325410]  ;;  %v837_v46 = vcombine.high %v1742_v41, %v1742_v41  ;;  %v1993_v30 = vld [vmem:[#allocation11 + $0x10] sm:$0xff]   ;;  %s1647_s6 = sshll.u32 %s2358_s5, 4  ;;  %s2980_s6 = int_to_ptr.vmem [resolvable:$true] %s1647_s6 }
  0x64   :  { %v940_v47 = vcombine.low %v1741_v39, %v1742_v41  ;;  %v1744_v49 = vld.sshfl [vmem:[%s3053_s2 + $0x20] sm:$0x33 pattern:$0x76325410]  ;;  %v328_v21 = vsel %vm327_vm0, %v326_v19, 0.0  ;;  %v356_v32 = vrot.slane %v326_v19, %v355_v29  ;;  %v362_v33 = vsub.s32 4, %v2505_v15  ;;  %p2257_p8 = scmp.lt.s32.totalorder %s2980_s6, %s2980_s6 }
  0x65   :  { %1883 = vmatpush3.bf16.msra.mxu1 %v1973_v6  ;;  %1940 = vmatprep.mubr.bf16.mxu0 %v922_v37  ;;  %v938_v44 = vrot.slane %v924_v38, %v2520_v22  ;;  %v941_v50 = vcombine.low %v837_v46, %v1743_v45  ;;  %v1745_v52 = vld.sshfl [vmem:[%s3053_s2 + $0x24] sm:$0x3 pattern:$0x76325410]  ;;  %v852_v53 = vcombine.high %v1744_v49, %v1744_v49  ;;  %v1994_v34 = vld [vmem:[#allocation11 + $0x8] sm:$0xff]   ;;  %v376_v38 = vsub.s32 6, %v2505_v15 }
  0x66   :  { %1884 = vmatprep.subr.bf16.mxu1 %v1975_v8  ;;  %1931 = vmatpush3.bf16.msra.mxu0 %v1976_v7  ;;  %v948_v51 = vrot.slane %v940_v47, %v2520_v22  ;;  %v1746_v55 = vld.sshfl [vmem:[%s3053_s2 + $0x28] sm:$0x33 pattern:$0x76325410]  ;;  %v341_v39 = vsub.s32 1, %v2505_v15  ;;  %v1209_v45 = vld [vmem:[#allocation7] sm:$0xff] }
  0x67   :  { %1932 = vmatprep.subr.bf16.mxu0 %v1978_v9  ;;  %v939_v54 = vcombine.low %v931_v40, %v938_v44  ;;  %v955_v56 = vrot.slane %v941_v50, %v2520_v22  ;;  %v957_v57 = vcombine.low %v1744_v49, %v852_v53  ;;  %v958_v58 = vcombine.low %v1745_v52, %v1746_v55  ;;  %v1747_v59 = vld.sshfl [vmem:[%s3053_s2 + $0x2c] sm:$0x3 pattern:$0x76325410]  ;;  %s2252_s9 = scalar_lea.vmem %s2980_s6, 512 }
  0x68   :  { %v867_v60 = vcombine.high %v1746_v55, %v1746_v55  ;;  %v1748_v62 = vld.sshfl [vmem:[%s3053_s2 + $0x30] sm:$0x33 pattern:$0x76325410]  ;;  %329 = vadd.xlane.f32.xlu0 %v328_v21  ;;  %v1997_v40 = vld [vmem:[#allocation5 + $0x8] sm:$0xff]   ;;  %v377_v41 = vrot.slane %v326_v19, %v376_v38  ;;  %v342_v44 = vrot.slane %v326_v19, %v341_v39  ;;  %v1224_v49 = vrot.slane %v1209_v45, %v341_v39  ;;  %p2253_p7 = scmp.ne.s32.totalorder %s2980_s6, %s2252_s9  ;;  %p2258_p9 = scmp.lt.s32.totalorder %s2252_s9, %s2252_s9 }
  0x69   :  { %1885 = vmatpush3.bf16.msra.mxu1 %v1975_v8  ;;  %v956_v63 = vcombine.low %v948_v51, %v955_v56  ;;  %v965_v0 = vrot.slane %v957_v57, %v2520_v22  ;;  %v1749_v1 = vld.sshfl [vmem:[%s3053_s2 + $0x34] sm:$0x3 pattern:$0x76325410]  ;;  %v972_v2 = vrot.slane %v958_v58, %v2520_v22  ;;  %v882_v3 = vcombine.high %v1748_v62, %v1748_v62  ;;  %v1989_v8 = vld [vmem:[#allocation2 + $0x18] sm:$0xff]  }
  0x6a   :  { %1886 = vmatprep.subr.bf16.mxu1 %v1977_v14  ;;  %1933 = vmatpush3.bf16.msra.mxu0 %v1978_v9  ;;  %v974_v4 = vcombine.low %v867_v60, %v1747_v59  ;;  %v1750_v5 = vld.sshfl [vmem:[%s3053_s2 + $0x38] sm:$0x33 pattern:$0x76325410]  ;;  %v1235_v50 = vrot.slane %v1209_v45, %v348_v11  ;;  %v1246_v51 = vrot.slane %v1209_v45, %v355_v29  ;;  %v2630_v21 = vld [vmem:[#allocation10] ss:$0 sm:$0xff]  ;;  %p2259_p10 = por %p2258_p9, %p2257_p8 }
  0x6b   :  { %1934 = vmatprep.subr.bf16.mxu0 %v1980_v17  ;;  %v1751_v6 = vld.sshfl [vmem:[%s3053_s2 + $0x3c] sm:$0x3 pattern:$0x76325410]  ;;  %v897_v7 = vcombine.high %v1750_v5, %v1750_v5  ;;  %v975_v9 = vcombine.low %v1748_v62, %v882_v3  ;;  %v1257_v52 = vrot.slane %v1209_v45, %v362_v33 }
  0x6c   :  { %v982_v10 = vrot.slane %v974_v4, %v2520_v22  ;;  %p2260_p11 = pnand %p2259_p10, %p2253_p7 }
  0x6d   :  { %1887 = vmatpush3.bf16.msra.mxu1 %v1977_v14  ;;  %v973_v14 = vcombine.low %v965_v0, %v972_v2  ;;  %v989_v16 = vrot.slane %v975_v9, %v2520_v22  ;;  %v1735_v9 = vld [vmem:[%s3061_s10] ss:$0 sm:$0xff] }
  0x6e   :  { %1888 = vmatprep.subr.bf16.mxu1 %v1979_v18  ;;  %1935 = vmatpush3.bf16.msra.mxu0 %v1980_v17  ;;  %v991_v17 = vcombine.low %v1749_v1, %v1750_v5 }
  0x6f   :  { %1936 = vmatprep.subr.bf16.mxu0 %v1983_v24  ;;  %v990_v20 = vcombine.low %v982_v10, %v989_v16 }
  0x70   :  { %v999_v26 = vrot.slane %v991_v17, %v2520_v22 }
  0x71   :  { %1889 = vmatpush3.bf16.msra.mxu1 %v1979_v18  ;;  %v992_v18 = vcombine.low %v897_v7, %v1751_v6 }
  0x72   :  { %1890 = vmatprep.subr.bf16.mxu1 %v1981_v23  ;;  %1937 = vmatpush3.bf16.msra.mxu0 %v1983_v24  ;;  %v334_v24 = vsub.s32 0, %v2505_v15 }
  0x73   :  { %1938 = vmatprep.subr.bf16.mxu0 %v1986_v36  ;;  %v1006_v27 = vrot.slane %v992_v18, %v2520_v22  ;;  %v363_v22 = vrot.slane %v326_v19, %v362_v33 }
  0x74   :  { %v335_v28 = vrot.slane %v326_v19, %v334_v24  ;;  %v1213_v47 = vrot.slane %v1209_v45, %v334_v24 }
  0x75   :  { %1891 = vmatpush3.bf16.msra.mxu1 %v1981_v23  ;;  %v349_v23 = vrot.slane %v326_v19, %v348_v11  ;;  %v1007_v31 = vcombine.low %v999_v26, %v1006_v27  ;;  %v2356_v11 = vmov 839922192  }
  0x76   :  { %1900 = vmatprep.subr.bf16.mxu1 %v1985_v35  ;;  %1939 = vmatpush3.bf16.msra.mxu0 %v1986_v36  ;;  %v1995_v36 = vld [vmem:[#allocation11] sm:$0xff]  }
  0x77   :  { %351 = vbcast.lane.b32.xlu1 %v349_v23, 256 }
  0x78   :  { %1893 = vmatmul.mubr.bf16.vlgmr.msra.gmra.mxu1 %v1984_v42  ;;  %v383_v42 = vsub.s32 7, %v2505_v15 }
  0x79   :  { %1901 = vmatpush3.bf16.msra.mxu1 %v1985_v35  ;;  %1896 = vmatprep.mubr.bf16.mxu1 %v1988_v43  ;;  %v369_v35 = vsub.s32 5, %v2505_v15  ;;  %v1998_v43 = vld [vmem:[#allocation5 + $0x10] sm:$0xff]  }
  0x7a   :  { %1902 = vmatprep.subr.bf16.mxu1 %v1987_v48  ;;  %1941 = vmatmul.mubr.bf16.vlgmr.msra.gmra.mxu0 %v939_v54  ;;  %v384_v46 = vrot.slane %v326_v19, %v383_v42  ;;  %v1279_v54 = vrot.slane %v1209_v45, %v376_v38  ;;  %v1290_v55 = vrot.slane %v1209_v45, %v383_v42 }
  0x7b   :  { %1944 = vmatprep.mubr.bf16.mxu0 %v956_v63  ;;  %337 = vbcast.lane.b32.xlu1 %v335_v28, 256  ;;  %v370_v37 = vrot.slane %v326_v19, %v369_v35  ;;  %v1268_v53 = vrot.slane %v1209_v45, %v369_v35  ;;  %v905_v19 = vcombine.high %v1735_v9, %v1735_v9 }
  0x7d   :  { %1903 = vmatpush3.bf16.msra.mxu1 %v1987_v48  ;;  %v1999_v48 = vld [vmem:[#allocation5 + $0x18] sm:$0xff]  }
  0x7e   :  { %1904 = vmatprep.subr.bf16.mxu1 %v1990_v61  ;;  %344 = vbcast.lane.b32.xlu0 %v342_v44, 256 }
  0x7f   :  { %358 = vbcast.lane.b32.xlu1 %v356_v32, 256 }
  0x80   :  { %1897 = vmatmul.mubr.bf16.gmra.mxu1 %v1989_v8 }
  0x81   :  { %1905 = vmatpush3.bf16.msra.mxu1 %v1990_v61  ;;  %1916 = vmatprep.mubr.bf16.mxu1 %v1996_v12  ;;  %v1315_v12 = vunpack.c.l.s4 %v2356_v11 }
  0x82   :  { %1906 = vmatprep.subr.bf16.mxu1 %v1991_v13  ;;  %1945 = vmatmul.mubr.bf16.gmra.mxu0 %v973_v14  ;;  %v2357_v14 = vmov 1985246804  }
  0x83   :  { %1948 = vmatprep.mubr.bf16.mxu0 %v990_v20  ;;  %365 = vbcast.lane.b32.xlu1 %v363_v22, 256  ;;  %v1322_v16 = vunpack.c.l.s4 %v2357_v14  ;;  %v1316_v24 = vunpack.c.0.s8 %v1315_v12 }
  0x84   :  { %1215 = vbcast.lane.b32.xlu0 %v1213_v47, 256 }
  0x85   :  { %1907 = vmatpush3.bf16.msra.mxu1 %v1991_v13  ;;  %v1323_v26 = vunpack.c.0.s8 %v1322_v16  ;;  %v2642_v22 = vsub.s32 %v1316_v24, %v2505_v15 }
  0x86   :  { %1908 = vmatprep.subr.bf16.mxu1 %v1992_v25 }
  0x87   :  { %372 = vbcast.lane.b32.xlu1 %v370_v37, 256  ;;  %v2647_v37 = vsub.s32 %v1323_v26, %v2505_v15 }
  0x88   :  { %1237 = vbcast.lane.b32.xlu0 %v1235_v50, 256 }
  0x89   :  { %1909 = vmatpush3.bf16.msra.mxu1 %v1992_v25  ;;  %v2632_v25 = vcombine.low %v905_v19, %v1735_v9 }
  0x8a   :  { %1910 = vmatprep.subr.bf16.mxu1 %v1993_v30  ;;  %1949 = vmatmul.mubr.bf16.gmra.mxu0 %v1007_v31  ;;  %v2637_v31 = vcombine.low %v1735_v9, %v905_v19 }
  0x8b   :  { %379 = vbcast.lane.b32.xlu1 %v377_v41, 256 }
  0x8c   :  { %1259 = vbcast.lane.b32.xlu0 %v1257_v52, 256 }
  0x8d   :  { %1911 = vmatpush3.bf16.msra.mxu1 %v1993_v30 }
  0x8e   :  { %1912 = vmatprep.subr.bf16.mxu1 %v1994_v34 }
  0x8f   :  { %386 = vbcast.lane.b32.xlu1 %v384_v46, 256  ;;  %v2653_v46 = vcombine.low %v1735_v9, %v1735_v9 }
  0x90   :  { %1281 = vbcast.lane.b32.xlu0 %v1279_v54, 256 }
  0x91   :  { %1913 = vmatpush3.bf16.msra.mxu1 %v1994_v34 }
  0x92   :  { %1914 = vmatprep.subr.bf16.mxu1 %v1995_v36 }
  0x93   :  { %1226 = vbcast.lane.b32.xlu1 %v1224_v49, 256 }
  0x94   :  { %1219 = vbcast.lane.b32.xlu0 %v1213_v47, 264 }
  0x95   :  { %1915 = vmatpush3.bf16.msra.mxu1 %v1995_v36 }
  0x97   :  { %1248 = vbcast.lane.b32.xlu1 %v1246_v51, 256 }
  0x98   :  { %1917 = vmatmul.mubr.bf16.vlgmr.msra.gmra.mxu1 %v1997_v40  ;;  %1241 = vbcast.lane.b32.xlu0 %v1235_v50, 264 }
  0x99   :  { %1920 = vmatprep.mubr.bf16.mxu1 %v1998_v43 }
  0x9b   :  { %1270 = vbcast.lane.b32.xlu1 %v1268_v53, 256 }
  0x9c   :  { %1263 = vbcast.lane.b32.xlu0 %v1257_v52, 264 }
  0x9f   :  { %1292 = vbcast.lane.b32.xlu1 %v1290_v55, 256 }
  0xa0   :  { %1921 = vmatmul.mubr.bf16.gmra.mxu1 %v1999_v48  ;;  %1285 = vbcast.lane.b32.xlu0 %v1279_v54, 264 }
  0xa3   :  { %1230 = vbcast.lane.b32.xlu1 %v1224_v49, 264 }
  0xa7   :  { %1252 = vbcast.lane.b32.xlu1 %v1246_v51, 264 }
  0xab   :  { %1274 = vbcast.lane.b32.xlu1 %v1268_v53, 264 }
  0xaf   :  { %1296 = vbcast.lane.b32.xlu1 %v1290_v55, 264 }
  0xe9   :  { %v2597_v56 = vpop.permute.xlu1 %351 }
  0xed   :  { %v2599_v57 = vpop.permute.xlu1 %337 }
  0xf1   :  { %v2601_v58 = vpop.permute.xlu1 %358  ;;  %v330_v60 = vpop.xlane.xlu0 %329 }
  0xf2   :  { %v331_v5 = vmax.f32 %v330_v60, 1.0 }
  0xf4   :  { %v446_v7 = vrot.slane %v331_v5, 2  ;;  %v447_v10 = vrot.slane %v331_v5, 3  ;;  %v448_v13 = vrot.slane %v331_v5, 4  ;;  %2000 = vrcp.f32 %v331_v5 }
  0xf5   :  { %v2603_v59 = vpop.permute.xlu1 %365  ;;  %v2607_v62 = vpop.permute.xlu0 %344  ;;  %v450_v18 = vrot.slane %v331_v5, 6  ;;  %v445_v20 = vrot.slane %v331_v5, 1  ;;  %v451_v23 = vrot.slane %v331_v5, 7  ;;  %v449_v29 = vrot.slane %v331_v5, 5 }
  0xf6   :  { %2002 = vrcp.f32 %v446_v7 }
  0xf7   :  { %2004 = vrcp.f32 %v447_v10 }
  0xf8   :  { %2006 = vrcp.f32 %v448_v13 }
  0xf9   :  { %v2605_v61 = vpop.permute.xlu1 %372  ;;  %v2611_v0 = vpop.permute.xlu0 %1215  ;;  %2008 = vrcp.f32 %v450_v18 }
  0xfa   :  { %2010 = vrcp.f32 %v445_v20  ;;  %v1320_v54 = vrot.slane %v2611_v0, %v2642_v22 }
  0xfb   :  { %2012 = vrcp.f32 %v451_v23 }
  0xfd   :  { %v2609_v63 = vpop.permute.xlu1 %379  ;;  %v2615_v2 = vpop.permute.xlu0 %1237 }
 0x101   :  { %v2613_v1 = vpop.permute.xlu1 %386  ;;  %v2619_v4 = vpop.permute.xlu0 %1259 }
 0x102   :  { %v2667_v60 = vpop.eup %2000 }
 0x103   :  { %v2674_v10 = vpop.eup %2002 }
 0x104   :  { %v2681_v18 = vpop.eup %2004 }
 0x105   :  { %v2617_v3 = vpop.permute.xlu1 %1226  ;;  %v2623_v8 = vpop.permute.xlu0 %1281 }
 0x106   :  { %3074 = vst [vmem:[#allocation27_spill] sm:$0xff] %v2623_v8  ;;  %v1348_v49 = vrot.slane %v2617_v3, %v2647_v37 }
 0x109   :  { %v2621_v6 = vpop.permute.xlu1 %1248  ;;  %v2634_v27 = vpop.permute.xlu0 %1219 }
 0x10d   :  { %v2628_v17 = vpop.permute.xlu1 %1270  ;;  %v2651_v43 = vpop.permute.xlu0 %1241 }
 0x111   :  { %v2639_v32 = vpop.permute.xlu1 %1292  ;;  %v2686_v24 = vpop.permute.xlu0 %1263 }
 0x115   :  { %v2661_v50 = vpop.permute.xlu1 %1230 }
 0x119   :  { %v2688_v26 = vpop.permute.xlu1 %1252 }
 0x138   :  { %v1894_v28 = vpop.f32.mrf.mxu1 }
 0x139   :  { %v280_v30 = vadd.f32 %v1894_v28, %v2630_v21  ;;  %v2690_v28 = vpop.eup %2006 }
 0x13a   :  { %v271_v33 = vpop.f32.mrf.mxu1  ;;  %v1942_v34 = vpop.f32.mrf.mxu0 }
 0x13b   :  { %2014 = vtanh.f32 %v280_v30  ;;  %v272_v35 = vadd.f32 %v2630_v21, %v271_v33  ;;  %v1111_v36 = vadd.f32 %v1942_v34, %v2632_v25 }
 0x13c   :  { %v1895_v38 = vpop.f32.mrf.mxu1  ;;  %v1102_v39 = vpop.f32.mrf.mxu0  ;;  %2016 = vrcp.f32 %v449_v29 }
 0x13d   :  { %2018 = vtanh.f32 %v272_v35  ;;  %v283_v40 = vadd.f32 %v1895_v38, %v2630_v21  ;;  %v1163_v41 = vcombine.high %v1111_v36, %v1111_v36  ;;  %v1103_v42 = vadd.f32 %v1102_v39, %v2637_v31 }
 0x13e   :  { %v274_v44 = vpop.f32.mrf.mxu1  ;;  %2020 = vtanh.f32 %v1111_v36  ;;  %v1943_v45 = vpop.f32.mrf.mxu0 }
 0x13f   :  { %2022 = vtanh.f32 %v283_v40  ;;  %v275_v47 = vadd.f32 %v2630_v21, %v274_v44  ;;  %v1114_v48 = vadd.f32 %v1943_v45, %v2637_v31  ;;  %v1161_v52 = vcombine.high %v1103_v42, %v1103_v42  ;;  %v2698_v36 = vpop.eup %2008 }
 0x140   :  { %2024 = vtanh.f32 %v1163_v41  ;;  %v1898_v51 = vpop.f32.mrf.mxu1  ;;  %v1105_v53 = vpop.f32.mrf.mxu0 }
 0x141   :  { %2026 = vtanh.f32 %v275_v47  ;;  %v296_v5 = vadd.f32 %v1898_v51, %v2630_v21  ;;  %v1106_v12 = vadd.f32 %v1105_v53, %v2653_v46  ;;  %v1164_v20 = vcombine.high %v1114_v48, %v1114_v48  ;;  %v2704_v41 = vpop.eup %2010  ;;  %v2724_v47 = vpop.permute.xlu0 %1285 }
 0x142   :  { %2028 = vtanh.f32 %v1103_v42  ;;  %v287_v11 = vpop.f32.mrf.mxu1  ;;  %v1946_v13 = vpop.f32.mrf.mxu0 }
 0x143   :  { %2030 = vtanh.f32 %v296_v5  ;;  %v288_v19 = vadd.f32 %v2630_v21, %v287_v11  ;;  %v1127_v39 = vadd.f32 %v1946_v13, %v2637_v31  ;;  %v1162_v42 = vcombine.high %v1106_v12, %v1106_v12 }
 0x144   :  { %2032 = vtanh.f32 %v1161_v52  ;;  %v1899_v29 = vpop.f32.mrf.mxu1  ;;  %v1118_v30 = vpop.f32.mrf.mxu0 }
 0x145   :  { %2034 = vtanh.f32 %v288_v19  ;;  %v299_v38 = vadd.f32 %v1899_v29, %v2630_v21  ;;  %v2710_v52 = vpop.eup %2012  ;;  %v1119_v13 = vadd.f32 %v1118_v30, %v2653_v46  ;;  %v2732_v30 = vpop.permute.xlu1 %1274 }
 0x146   :  { %2036 = vtanh.f32 %v1114_v48  ;;  %v290_v44 = vpop.f32.mrf.mxu1  ;;  %v1947_v45 = vpop.f32.mrf.mxu0  ;;  %v1355_v48 = vrot.slane %v2661_v50, %v2642_v22  ;;  %v1167_v50 = vcombine.high %v1127_v39, %v1127_v39 }
 0x147   :  { %2038 = vtanh.f32 %v1164_v20  ;;  %v291_v53 = vadd.f32 %v2630_v21, %v290_v44  ;;  %v1130_v51 = vadd.f32 %v1947_v45, %v2653_v46 }
 0x148   :  { %v2717_v11 = vpop.eup %2014  ;;  %2040 = vtanh.f32 %v299_v38  ;;  %v1121_v19 = vpop.f32.mrf.mxu0 }
 0x149   :  { %v2726_v21 = vpop.eup %2016  ;;  %v390_v44 = vmul.f32 %v2717_v11, %v2597_v56  ;;  %2042 = vtanh.f32 %v1106_v12  ;;  %v2748_v45 = vadd.f32 %v1121_v19, %v2632_v25  ;;  %v1168_v38 = vcombine.high %v1130_v51, %v1130_v51 }
 0x14a   :  { %v2734_v5 = vpop.eup %2018  ;;  %2044 = vtanh.f32 %v1162_v42  ;;  %v1950_v40 = vpop.f32.mrf.mxu0  ;;  %v1165_v42 = vcombine.high %v1119_v13, %v1119_v13 }
 0x14b   :  { %v2021_v56 = vpop.eup %2020  ;;  %v408_v12 = vrot.slane %v390_v44, 4  ;;  %v388_v20 = vmul.f32 %v2734_v5, %v2599_v57  ;;  %2046 = vtanh.f32 %v291_v53  ;;  %v2751_v35 = vadd.f32 %v1950_v40, %v2653_v46 }
 0x14c   :  { %v2745_v29 = vpop.eup %2022  ;;  %2048 = vtanh.f32 %v1127_v39  ;;  %v1134_v53 = vpop.f32.mrf.mxu0  ;;  %v1166_v39 = vcombine.high %v2748_v45, %v2748_v45  ;;  %v2762_v46 = vmul.f32 %v2021_v56, %v1348_v49 }
 0x14d   :  { %3075 = vst [vmem:[#allocation28_spill] sm:$0xff] %v2745_v29  ;;  %v2025_v23 = vpop.eup %2024  ;;  %v409_v9 = vadd.f32 %v408_v12, %v390_v44  ;;  %v396_v34 = vrot.slane %v388_v20, 4  ;;  %v391_v57 = vmul.f32 %v2745_v29, %v2601_v58  ;;  %2050 = vtanh.f32 %v1167_v50 }
 0x14e   :  { %v2755_v33 = vpop.eup %2026  ;;  %2052 = vtanh.f32 %v1119_v13  ;;  %v2774_v16 = vadd.f32 %v1134_v53, %v2632_v25  ;;  %v2776_v49 = vmul.f32 %v2025_v23, %v1355_v48  ;;  %v1951_v14 = vpop.f32.mrf.mxu0 }
 0x14f   :  { %v2029_v40 = vpop.eup %2028  ;;  %v410_v19 = vrot.slane %v409_v9, 2  ;;  %v397_v44 = vadd.f32 %v396_v34, %v388_v20  ;;  %v414_v12 = vrot.slane %v391_v57, 4  ;;  %v389_v58 = vmul.f32 %v2755_v33, %v2607_v62 }
 0x150   :  { %v2766_v50 = vpop.eup %2030  ;;  %v1506_v13 = vmul.f32 %v2029_v40, %v1320_v54  ;;  %2054 = vtanh.f32 %v1165_v42  ;;  %v3078_v54 = vrot.slane %v2611_v0, %v2647_v37  ;;  %v2788_v23 = vadd.f32 %v1951_v14, %v2632_v25 }
 0x151   :  { %3076 = vst [vmem:[#allocation29_spill] sm:$0xff] %v2766_v50  ;;  %v2033_v56 = vpop.eup %2032  ;;  %v398_v34 = vrot.slane %v397_v44, 2  ;;  %v415_v20 = vadd.f32 %v414_v12, %v391_v57  ;;  %v394_v62 = vmul.f32 %v2766_v50, %v2609_v63  ;;  %v402_v55 = vrot.slane %v389_v58, 4 }
 0x152   :  { %v2780_v15 = vpop.eup %2034  ;;  %v1507_v40 = vmul.f32 %v2033_v56, %v3078_v54  ;;  %v2790_v57 = vadd.f32 %v410_v19, %v409_v9  ;;  %2056 = vtanh.f32 %v1130_v51 }
 0x153   :  { %3077 = vst [vmem:[#allocation30_spill] sm:$0xff] %v2780_v15  ;;  %v2037_v48 = vpop.eup %2036  ;;  %v399_v12 = vadd.f32 %v398_v34, %v397_v44  ;;  %v416_v63 = vrot.slane %v415_v20, 2  ;;  %v392_v42 = vmul.f32 %v2780_v15, %v2603_v59  ;;  %v432_v8 = vrot.slane %v394_v62, 4 }
 0x154   :  { %v2039_v7 = vpop.eup %2038  ;;  %v403_v50 = vadd.f32 %v402_v55, %v389_v58  ;;  %v1546_v0 = vcombine.low %v1506_v13, %v1507_v40  ;;  %2058 = vtanh.f32 %v1168_v38  ;;  %v412_v34 = vrot.slane %v2790_v57, 1 }
 0x155   :  { %v2794_v56 = vpop.eup %2040  ;;  %v400_v54 = vrot.slane %v399_v12, 1  ;;  %v417_v53 = vadd.f32 %v416_v63, %v415_v20  ;;  %v420_v29 = vrot.slane %v392_v42, 4  ;;  %v433_v9 = vadd.f32 %v432_v8, %v394_v62 }
 0x156   :  { %3079 = vst [vmem:[#allocation31_spill] sm:$0xff] %v2794_v56  ;;  %v2796_v25 = vpop.eup %2042  ;;  %v404_v14 = vrot.slane %v403_v50, 2  ;;  %v395_v19 = vmul.f32 %v2794_v56, %v2613_v1  ;;  %v1776_v44 = vpack.c.bf16 %v1546_v0, %v1546_v0  ;;  %2060 = vtanh.f32 %v2748_v45 }
 0x157   :  { %v2045_v59 = vpop.eup %2044  ;;  %v401_v55 = vadd.f32 %v400_v54, %v399_v12  ;;  %v421_v51 = vadd.f32 %v420_v29, %v392_v42  ;;  %v418_v13 = vrot.slane %v417_v53, 1  ;;  %v434_v20 = vrot.slane %v433_v9, 2 }
 0x158   :  { %v2802_v58 = vpop.eup %2046  ;;  %v405_v38 = vadd.f32 %v404_v14, %v403_v50  ;;  %v438_v40 = vrot.slane %v395_v19, 4  ;;  %1626 = vst [vmem:[%s3066_s15] sm:$0xf] %v1776_v44  ;;  %v2807_v8 = vpop.f32.mrf.mxu1  ;;  %2062 = vtanh.f32 %v1166_v39  ;;  %v3081_v0 = vrot.slane %v2617_v3, %v2642_v22 }
 0x159   :  { %3080 = vst [vmem:[#allocation32_spill] sm:$0xff] %v2802_v58  ;;  %v2049_v1 = vpop.eup %2048  ;;  %v422_v62 = vrot.slane %v421_v51, 2  ;;  %v393_v12 = vmul.f32 %v2802_v58, %v2605_v61  ;;  %v2812_v29 = vmul.f32 %v2667_v60, %v401_v55  ;;  %v435_v63 = vadd.f32 %v434_v20, %v433_v9 }
 0x15a   :  { %v2051_v45 = vpop.eup %2050  ;;  %v406_v42 = vrot.slane %v405_v38, 1  ;;  %v439_v50 = vadd.f32 %v438_v40, %v395_v19  ;;  %v1509_v54 = vmul.f32 %v2045_v59, %v3081_v0  ;;  %v2817_v14 = vpop.f32.mrf.mxu1  ;;  %v3082_v61 = vrot.slane %v2615_v2, %v2642_v22 }
 0x15b   :  { %v2819_v44 = vpop.eup %2052  ;;  %v423_v56 = vadd.f32 %v422_v62, %v421_v51  ;;  %v426_v15 = vrot.slane %v393_v12, 4  ;;  %2064 = vtanh.f32 %v2812_v29  ;;  %v436_v39 = vrot.slane %v435_v63, 1 }
 0x15c   :  { %v1512_v60 = vmul.f32 %v2037_v48, %v3082_v61  ;;  %v407_v9 = vadd.f32 %v406_v42, %v405_v38  ;;  %v440_v55 = vrot.slane %v439_v50, 2  ;;  %v1547_v19 = vcombine.low %v1509_v54, %v2762_v46  ;;  %v1919_v20 = vpop.f32.mrf.mxu1 }
 0x15d   :  { %v424_v3 = vrot.slane %v423_v56, 1  ;;  %v427_v59 = vadd.f32 %v426_v15, %v393_v12  ;;  %2066 = vtanh.f32 %v2751_v35  ;;  %v3083_v51 = vrot.slane %v2615_v2, %v2647_v37  ;;  %v2055_v62 = vpop.eup %2054 }
 0x15e   :  { %v437_v0 = vadd.f32 %v436_v39, %v435_v63  ;;  %v2831_v58 = vmul.f32 %v2704_v41, %v407_v9  ;;  %v441_v48 = vadd.f32 %v440_v55, %v439_v50  ;;  %v1778_v61 = vpack.c.bf16 %v1547_v19, %v1547_v19  ;;  %v679_v38 = vpop.f32.mrf.mxu1  ;;  %v1722_v55 = vld [vmem:[#allocation13] ss:$0 sm:$0xff] }
 0x15f   :  { %v1513_v40 = vmul.f32 %v2039_v7, %v3083_v51  ;;  %v428_v42 = vrot.slane %v427_v59, 2  ;;  %v3084_v46 = vcombine.high %v2751_v35, %v2751_v35  ;;  %v1172_v12 = vcombine.high %v2788_v23, %v2788_v23  ;;  %v2057_v35 = vpop.eup %2056 }
 0x160   :  { %v2839_v2 = vadd.f32 %v412_v34, %v2790_v57  ;;  %v2842_v7 = vmul.f32 %v2698_v36, %v437_v0  ;;  %v442_v41 = vrot.slane %v441_v48, 1  ;;  %1628 = vst [vmem:[%s3066_s15 + $0x8] sm:$0xf] %v1778_v61  ;;  %v1922_v63 = vpop.f32.mrf.mxu1  ;;  %v2848_v50 = vadd.f32 %v418_v13, %v417_v53  ;;  %v1137_v57 = vpop.f32.mrf.mxu0 }
 0x161   :  { %2068 = vtanh.f32 %v3084_v46  ;;  %v1548_v15 = vcombine.low %v1512_v60, %v1513_v40  ;;  %v2850_v54 = vadd.f32 %v428_v42, %v427_v59  ;;  %v2853_v34 = vpop.eup %2058  ;;  %v2855_v36 = vadd.f32 %v424_v3, %v423_v56 }
 0x162   :  { %2070 = vtanh.f32 %v2831_v58  ;;  %v523_v39 = vrot.slane %v2831_v58, 7  ;;  %v443_v9 = vadd.f32 %v442_v41, %v441_v48  ;;  %v692_v19 = vpop.f32.mrf.mxu1  ;;  %v3085_v53 = vcombine.high %v2774_v16, %v2774_v16 }
 0x163   :  { %v1780_v60 = vpack.c.bf16 %v1548_v15, %v1548_v15  ;;  %2072 = vtanh.f32 %v2774_v16  ;;  %v3086_v13 = vrot.slane %v2621_v6, %v2642_v22  ;;  %v3087_v3 = vrot.slane %v2619_v4, %v2642_v22  ;;  %v2061_v0 = vpop.eup %2060 }
 0x164   :  { %2074 = vtanh.f32 %v2842_v7  ;;  %v3088_v51 = vrot.slane %v2619_v4, %v2647_v37  ;;  %v430_v48 = vrot.slane %v2850_v54, 1  ;;  %v2876_v61 = vmul.f32 %v2710_v52, %v443_v9 }
 0x165   :  { %1630 = vst [vmem:[%s3066_s15 + $0x10] sm:$0xf] %v1780_v60  ;;  %2076 = vtanh.f32 %v3085_v53  ;;  %v1515_v56 = vmul.f32 %v2055_v62, %v3086_v13  ;;  %v1518_v59 = vmul.f32 %v2049_v1, %v3087_v3  ;;  %v1138_v16 = vadd.f32 %v1137_v57, %v2637_v31  ;;  %v1923_v62 = vpop.f32.mrf.mxu1 }
 0x166   :  { %v1519_v40 = vmul.f32 %v2051_v45, %v3088_v51  ;;  %2078 = vtanh.f32 %v2788_v23  ;;  %v3089_v42 = vrot.slane %v2621_v6, %v2647_v37  ;;  %v685_v4 = vadd.f32 %v2807_v8, %v1722_v55  ;;  %v2063_v45 = vpop.eup %2062  ;;  %v1297_v51 = vpop.permute.xlu1 %1296 }
 0x167   :  { %2080 = vtanh.f32 %v1172_v12  ;;  %v1170_v15 = vcombine.high %v1138_v16, %v1138_v16  ;;  %v677_v52 = vadd.f32 %v1722_v55, %v2817_v14  ;;  %v3090_v23 = vrot.slane %v2634_v27, %v2642_v22  ;;  %v695_v53 = vpop.f32.mrf.mxu1 }
 0x168   :  { %v1516_v1 = vmul.f32 %v2061_v0, %v3089_v42  ;;  %v1550_v46 = vcombine.low %v1518_v59, %v1519_v40  ;;  %2082 = vtanh.f32 %v2876_v61  ;;  %v688_v6 = vadd.f32 %v1919_v20, %v1722_v55  ;;  %v2890_v57 = vpop.eup %2064 }
 0x169   :  { %v1508_v31 = vmul.f32 %v2796_v25, %v3090_v23  ;;  %2084 = vtanh.f32 %v1138_v16  ;;  %v1779_v8 = vpack.c.bf16 %v2776_v49, %v2776_v49  ;;  %v680_v9 = vadd.f32 %v1722_v55, %v679_v38 }
 0x16a   :  { %v1549_v41 = vcombine.low %v1515_v56, %v1516_v1  ;;  %v1784_v60 = vpack.c.bf16 %v1550_v46, %v1550_v46  ;;  %2086 = vtanh.f32 %v1170_v15  ;;  %v3091_v27 = vrot.slane %v2651_v43, %v2642_v22  ;;  %v2067_v20 = vpop.eup %2066  ;;  %v3099_v15 = vld [vmem:[#allocation28_spill] sm:$0xff] }
 0x16b   :  { %v1777_v12 = vpack.c.bf16 %v1508_v31, %v1508_v31  ;;  %2088 = vtanh.f32 %v685_v4  ;;  %v701_v14 = vadd.f32 %v1922_v63, %v1722_v55  ;;  %1629 = vst [vmem:[%s3066_s15 + $0xc] sm:$0x3] %v1779_v8  ;;  %v693_v49 = vadd.f32 %v1722_v55, %v692_v19 }
 0x16c   :  { %v1782_v13 = vpack.c.bf16 %v1549_v41, %v1549_v41  ;;  %1634 = vst [vmem:[%s3066_s15 + $0x20] sm:$0xf] %v1784_v60  ;;  %v1514_v25 = vmul.f32 %v2819_v44, %v3091_v27  ;;  %2090 = vtanh.f32 %v677_v52  ;;  %v3092_v38 = vrot.slane %v2686_v24, %v2642_v22  ;;  %v3103_v60 = vld [vmem:[#allocation29_spill] sm:$0xff] }
 0x16d   :  { %1627 = vst [vmem:[%s3066_s15 + $0x4] sm:$0x3] %v1777_v12  ;;  %v704_v3 = vadd.f32 %v1923_v62, %v1722_v55  ;;  %2092 = vtanh.f32 %v688_v6  ;;  %v3093_v44 = vrot.slane %v2688_v26, %v2642_v22  ;;  %v696_v59 = vadd.f32 %v1722_v55, %v695_v53  ;;  %v3104_v6 = vld [vmem:[#allocation31_spill] sm:$0xff] }
 0x16e   :  { %v1520_v56 = vmul.f32 %v2057_v35, %v3092_v38  ;;  %1632 = vst [vmem:[%s3066_s15 + $0x18] sm:$0xf] %v1782_v13  ;;  %v1781_v43 = vpack.c.bf16 %v1514_v25, %v1514_v25  ;;  %v2069_v40 = vpop.eup %2068  ;;  %2094 = vtanh.f32 %v680_v9  ;;  %v3094_v24 = vrot.slane %v2724_v47, %v2642_v22  ;;  %v3105_v25 = vld [vmem:[#allocation27_spill] sm:$0xff] }
 0x16f   :  { %v1517_v63 = vmul.f32 %v2063_v45, %v3093_v44  ;;  %v431_v0 = vadd.f32 %v430_v48, %v2850_v54  ;;  %v2920_v16 = vpop.eup %2070  ;;  %v3095_v62 = vrot.slane %v2628_v17, %v2642_v22  ;;  %2096 = vtanh.f32 %v701_v14 }
 0x170   :  { %v1785_v19 = vpack.c.bf16 %v1520_v56, %v1520_v56  ;;  %v1526_v35 = vmul.f32 %v2067_v20, %v3094_v24  ;;  %1631 = vst [vmem:[%s3066_s15 + $0x14] sm:$0x3] %v1781_v43  ;;  %v2931_v47 = vmul.f32 %v2674_v10, %v2839_v2  ;;  %v2073_v54 = vpop.eup %2072  ;;  %2098 = vtanh.f32 %v693_v49 }
 0x171   :  { %v1521_v26 = vmul.f32 %v2853_v34, %v3095_v62  ;;  %v1783_v55 = vpack.c.bf16 %v1517_v63, %v1517_v63  ;;  %v1481_v34 = vrot.slane %v1297_v51, %v2642_v22  ;;  %v2939_v42 = vmul.f32 %v2681_v18, %v2848_v50  ;;  %v2941_v1 = vpop.eup %2074 }
 0x172   :  { %1635 = vst [vmem:[%s3066_s15 + $0x24] sm:$0x3] %v1785_v19  ;;  %v1789_v48 = vpack.c.bf16 %v1526_v35, %v1526_v35  ;;  %v524_v10 = vsel %vm493_vm1, %v523_v39, %v2812_v29  ;;  %v3096_v2 = vrot.slane %v2628_v17, %v2647_v37  ;;  %2100 = vtanh.f32 %v704_v3  ;;  %v2077_v50 = vpop.eup %2076 }
 0x173   :  { %1633 = vst [vmem:[%s3066_s15 + $0x1c] sm:$0x3] %v1783_v55  ;;  %v2955_v18 = vmul.f32 %v2690_v28, %v2855_v36  ;;  %v3097_v58 = vrot.slane %v2639_v32, %v2642_v22  ;;  %2102 = vtanh.f32 %v696_v59  ;;  %v471_v17 = vmul.f32 %v2726_v21, %v431_v0  ;;  %v2079_v4 = vpop.eup %2078 }
 0x174   :  { %v1522_v46 = vmul.f32 %v2073_v54, %v3096_v2  ;;  %1639 = vst [vmem:[%s3066_s15 + $0x34] sm:$0x3] %v1789_v48  ;;  %v1795_v39 = vpack.c.bf16 %v2755_v33, %v2734_v5  ;;  %v3098_v36 = vrot.slane %v2732_v30, %v2642_v22  ;;  %2104 = vtanh.f32 %v2931_v47  ;;  %v2081_v23 = vpop.eup %2080  ;;  %v3101_v33 = vld [vmem:[#allocation30_spill] sm:$0xff]  ;;  %v3102_v5 = vld [vmem:[#allocation32_spill] sm:$0xff] }
 0x175   :  { %v1527_v29 = vmul.f32 %v2069_v40, %v3097_v58  ;;  %v1800_v52 = vpack.c.bf16 %v3099_v15, %v2717_v11  ;;  %v3100_v31 = vrot.slane %v2639_v32, %v2647_v37  ;;  %2106 = vtanh.f32 %v2939_v42  ;;  %v2982_v12 = vpop.eup %2082 }
 0x176   :  { %v1551_v28 = vcombine.low %v1521_v26, %v1522_v46  ;;  %v1523_v45 = vmul.f32 %v2077_v50, %v3098_v36  ;;  %1796 = vst [vmem:[#allocation14] sm:$0xff] %v1795_v39   ;;  %v1805_v21 = vpack.c.bf16 %v3102_v5, %v3101_v33  ;;  %v1810_v30 = vpack.c.bf16 %v3104_v6, %v3103_v60  ;;  %v2085_v32 = vpop.eup %2084 }
 0x177   :  { %v1528_v41 = vmul.f32 %v2079_v4, %v3100_v31  ;;  %v1529_v9 = vmul.f32 %v2081_v23, %v1481_v34  ;;  %2108 = vtanh.f32 %v2955_v18  ;;  %1832 = vst [vmem:[#allocation14 + $0x8] sm:$0xff] %v1800_v52   ;;  %v525_v13 = vrot.slane %v2931_v47, 6  ;;  %v2087_v27 = vpop.eup %2086 }
 0x178   :  { %v1786_v8 = vpack.c.bf16 %v1551_v28, %v1551_v28  ;;  %v1787_v11 = vpack.c.bf16 %v1523_v45, %v1523_v45  ;;  %2110 = vtanh.f32 %v471_v17  ;;  %1833 = vst [vmem:[#allocation14 + $0x10] sm:$0xff] %v1805_v21   ;;  %1834 = vst [vmem:[#allocation14 + $0x18] sm:$0xff] %v1810_v30   ;;  %v3106_v14 = vrot.slane %v3105_v25, %v2642_v22 }
 0x179   :  { %v1553_v53 = vcombine.low %v1527_v29, %v1528_v41  ;;  %v1791_v49 = vpack.c.bf16 %v1529_v9, %v1529_v9 }
 0x17a   :  { %1636 = vst [vmem:[%s3066_s15 + $0x28] sm:$0xf] %v1786_v8  ;;  %v1524_v20 = vmul.f32 %v2085_v32, %v3106_v14  ;;  %1637 = vst [vmem:[%s3066_s15 + $0x2c] sm:$0x3] %v1787_v11 }
 0x17b   :  { %2263 = shalt.err (!%p2260_p11)
}
 0x17c   :  { %1653 = dma.vmem_to_hbm [thread:$0]  %s2980_s6, 512, %s3062_s11, [#allocation4], %s2348_s23, %s2348_s23, %s2349_s24   ;;  %v527_v22 = vrot.slane %v2939_v42, 5  ;;  %v529_v38 = vrot.slane %v2955_v18, 4  ;;  %v2089_v56 = vpop.eup %2088  ;;  %v3107_v3 = vrot.slane %v3105_v25, %v2647_v37  ;;  %v1790_v44 = vpack.c.bf16 %v1553_v53, %v1553_v53 }
 0x17d   :  { %v526_v63 = vsel %vm496_vm2, %v525_v13, %v524_v10  ;;  %v531_v59 = vrot.slane %v471_v17, 3  ;;  %v2091_v51 = vpop.eup %2090  ;;  %1641 = vst [vmem:[%s3066_s15 + $0x3c] sm:$0x3] %v1791_v49  ;;  %vm508_vm6 = vcmask 1046534   ;;  %v533_v24 = vrot.slane %v2842_v7, 2  ;;  %s2359_s16 = smov [#allocation18]  }
 0x17e   :  { %v1525_v43 = vmul.f32 %v2087_v27, %v3107_v3  ;;  %v528_v40 = vsel %vm499_vm3, %v527_v22, %v526_v63  ;;  %v2093_v19 = vpop.eup %2092  ;;  %1640 = vst [vmem:[%s3066_s15 + $0x38] sm:$0xf] %v1790_v44  ;;  %vm511_vm7 = vcmask 1047559   ;;  %v535_v26 = vrot.slane %v2876_v61, 1  ;;  %s1679_s0 = sshll.u32 %s2359_s16, 4  ;;  %s1680_s0 = int_to_ptr.vmem [resolvable:$true] %s1679_s0 }
 0x17f   :  { %v530_v37 = vsel %vm502_vm4, %v529_v38, %v528_v40  ;;  %v2095_v0 = vpop.eup %2094  ;;  %v1820_v55 = vpack.c.bf16 %v2093_v19, %v2089_v56  ;;  %v492_v54 = vrot.slane %v2920_v16, 7  ;;  %p2277_p13 = scmp.lt.s32.totalorder %s1680_s0, %s1680_s0 }
 0x180   :  { %v1552_v35 = vcombine.low %v1524_v20, %v1525_v43  ;;  %v532_v62 = vsel %vm505_vm5, %v531_v59, %v530_v37  ;;  %v2097_v47 = vpop.eup %2096  ;;  %v1815_v34 = vpack.c.bf16 %v2095_v0, %v2091_v51 }
 0x181   :  { %v534_v7 = vsel %vm508_vm6, %v533_v24, %v532_v62  ;;  %v2099_v42 = vpop.eup %2098  ;;  %1835 = vst [vmem:[#allocation18 + $0x8] sm:$0xff] %v1820_v55   ;;  %v494_v18 = vsel %vm493_vm1, %v492_v54, %v2890_v57 }
 0x182   :  { %v1788_v48 = vpack.c.bf16 %v1552_v35, %v1552_v35  ;;  %v536_v10 = vsel %vm511_vm7, %v535_v26, %v534_v7  ;;  %v2101_v2 = vpop.eup %2100  ;;  %1816 = vst [vmem:[#allocation18] sm:$0xff] %v1815_v34  }
 0x183   :  { %538 = vst [vmem:[#allocation17] sm:$0xff] %v536_v10  ;;  %v2103_v61 = vpop.eup %2102  ;;  %v1830_v46 = vpack.c.bf16 %v2101_v2, %v2097_v47 }
 0x184   :  { %1638 = vst [vmem:[%s3066_s15 + $0x30] sm:$0xf] %v1788_v48  ;;  %v2105_v16 = vpop.eup %2104  ;;  %v1825_v50 = vpack.c.bf16 %v2103_v61, %v2099_v42  ;;  %s2272_s15 = scalar_lea.vmem %s1680_s0, 512 }
 0x185   :  { %v2107_v58 = vpop.eup %2106  ;;  %v495_v29 = vrot.slane %v2105_v16, 6  ;;  %1837 = vst [vmem:[#allocation18 + $0x18] sm:$0xff] %v1830_v46   ;;  %p2273_p12 = scmp.ne.s32.totalorder %s1680_s0, %s2272_s15  ;;  %p2278_p0 = scmp.lt.s32.totalorder %s2272_s15, %s2272_s15 }
 0x186   :  { %v2109_v17 = vpop.eup %2108  ;;  %v498_v39 = vrot.slane %v2107_v58, 5  ;;  %1836 = vst [vmem:[#allocation18 + $0x10] sm:$0xff] %v1825_v50  }
 0x187   :  { %v2111_v4 = vpop.eup %2110  ;;  %v497_v28 = vsel %vm496_vm2, %v495_v29, %v494_v18  ;;  %v501_v36 = vrot.slane %v2109_v17, 4  ;;  %p2279_p1 = por %p2278_p0, %p2277_p13 }
 0x189   :  { %p2280_p2 = pnand %p2279_p1, %p2273_p12 }
 0x18b   :  { %2283 = shalt.err (!%p2280_p2)
}
 0x18c   :  { %1685 = dma.vmem_to_hbm [thread:$0]  %s1680_s0, 512, %s3065_s14, [#allocation19], %s2348_s23, %s2348_s23, %s2349_s24   ;;  %v500_v57 = vsel %vm499_vm3, %v498_v39, %v497_v28  ;;  %v504_v45 = vrot.slane %v2111_v4, 3  ;;  %v507_v52 = vrot.slane %v2941_v1, 2  ;;  %v510_v31 = vrot.slane %v2982_v12, 1 }
 0x18d   :  { %s2360_s19 = smov [#allocation15]   ;;  %v503_v15 = vsel %vm502_vm4, %v501_v36, %v500_v57  ;;  %s2361_s3 = smov [#allocation17]  }
 0x18e   :  { %s1660_s4 = sshll.u32 %s2360_s19, 4  ;;  %s1670_s21 = sshll.u32 %s2361_s3, 4  ;;  %v506_v23 = vsel %vm505_vm5, %v504_v45, %v503_v15  ;;  %s1661_s4 = int_to_ptr.vmem [resolvable:$true] %s1660_s4  ;;  %s1671_s21 = int_to_ptr.vmem [resolvable:$true] %s1670_s21 }
 0x18f   :  { %v509_v41 = vsel %vm508_vm6, %v507_v52, %v506_v23  ;;  %s2292_s14 = scalar_lea.vmem %s1661_s4, 128  ;;  %p2297_p4 = scmp.lt.s32.totalorder %s1661_s4, %s1661_s4 }
 0x190   :  { %v512_v33 = vsel %vm511_vm7, %v510_v31, %v509_v41  ;;  %p2293_p3 = scmp.ne.s32.totalorder %s1661_s4, %s2292_s14  ;;  %p2298_p5 = scmp.lt.s32.totalorder %s2292_s14, %s2292_s14 }
 0x191   :  { %514 = vst [vmem:[#allocation15] sm:$0xff] %v512_v33 }
 0x192   :  { %p2299_p6 = por %p2298_p5, %p2297_p4 }
 0x194   :  { %p2300_p7 = pnand %p2299_p6, %p2293_p3 }
 0x196   :  { %2303 = shalt.err (!%p2300_p7)
}
 0x197   :  { %1663 = dma.vmem_to_hbm [thread:$0]  %s1661_s4, 128, %s3063_s12, [#allocation16]  }
 0x198   :  { %s2312_s5 = scalar_lea.vmem %s1671_s21, 128  ;;  %p2317_p9 = scmp.lt.s32.totalorder %s1671_s21, %s1671_s21 }
 0x199   :  { %p2313_p8 = scmp.ne.s32.totalorder %s1671_s21, %s2312_s5  ;;  %p2318_p10 = scmp.lt.s32.totalorder %s2312_s5, %s2312_s5 }
 0x19b   :  { %p2319_p11 = por %p2318_p10, %p2317_p9 }
 0x19d   :  { %p2320_p12 = pnand %p2319_p11, %p2313_p8 }
 0x19f   :  { %2323 = shalt.err (!%p2320_p12)
}
 0x1a0   :  { %1673 = dma.vmem_to_hbm [thread:$0]  %s1671_s21, 128, %s3064_s13, [#allocation16]  }
 0x1a1   :  { %2340 = dma.done.wait [#allocation4], 512  }
 0x1a2   :  { %2341 = vsyncadd [#allocation4], 4294966784 }
 0x1a3   :  { %2342 = dma.done.wait [#allocation16], 256  }
 0x1a4   :  { %2343 = vsyncadd [#allocation16], 4294967040 }
 0x1a5   :  { %2344 = dma.done.wait [#allocation19], 512  }
 0x1a6   :  { %2345 = vsyncadd [#allocation19], 4294966784 }
 0x1a7   :  { %1702 = vsyncpa [#allocation3], 1 }
 0x1a8   :  { %1703 = vsyncpa [#allocation6], 1 }
 0x1a9   :  { %1704 = vsyncpa [#allocation9], 1 }
 0x1aa   :  { %1705 = vsyncpa [#allocation12], 1 }
 0x1ab   :  { %1706 = vsyncpa [#allocation4], 1 }
 0x1ac   :  { %1707 = vsyncpa [#allocation16], 1 }
 0x1ad   :  { %1708 = vsyncpa [#allocation19], 1 }

</bundles_post_ra>
